<compile_context>
chip_gen: v5e
topology: v5e:2x2
jax: 0.10.0
libtpu: 0.0.40
codegen_flags: <defaults>
</compile_context>

<pallas_src>
import math

import jax
import jax.numpy as jnp
from jax.experimental import pallas as pl
from jax.experimental.pallas import tpu as pltpu


def _round_up(a, b):
    return ((a + b - 1) // b) * b


def _gcn_kernel(x_ref, w_ref, a_ref, o_ref):
    # x_ref: (tm, D_in) bf16 | w_ref: (D_in, D_out) bf16 | a_ref: (D_out, M) bf16
    # o_ref: (tm, M) f32
    h = jnp.dot(x_ref[...], w_ref[...], preferred_element_type=jnp.float32)
    z = jnp.dot(h.astype(jnp.bfloat16), a_ref[...],
                preferred_element_type=jnp.float32)
    # Numerically-stable softmax over the last axis (== torch dim=1 for 2-D).
    z = z - jnp.max(z, axis=-1, keepdims=True)
    e = jnp.exp(z)
    denom = jnp.sum(e, axis=-1, keepdims=True)
    inv = pl.reciprocal(denom, approx=True)     # EUP slot; keeps VALU free
    o_ref[...] = (e * inv).astype(o_ref.dtype)


def _vmem_limit_bytes(tm, d_in, d_out, m, single_buffer_consts):
    bf16, f32 = 2, 4
    cbuf = 1 if single_buffer_consts else 2
    est = (2 * tm * d_in * bf16            # x tile (double-buffered)
           + cbuf * d_in * d_out * bf16    # weights (grid-invariant)
           + cbuf * d_out * m * bf16       # adjacency (grid-invariant)
           + 2 * tm * m * f32              # out tile (double-buffered)
           + tm * d_out * f32              # h intermediate
           + 2 * tm * m * f32)             # softmax temporaries
    return int(min(64 * 2**20, max(32 * 2**20, 2 * est)))


def _build_call(n_pad, d_in, d_out, m, tm, single_buffer_consts):
    const_kw = {}
    if single_buffer_consts:
        # Grid-invariant operands: a second pipeline buffer is wasted VMEM.
        const_kw = dict(pipeline_mode=pl.Buffered(1))
    grid_spec = pltpu.PrefetchScalarGridSpec(
        num_scalar_prefetch=0,
        grid=(n_pad // tm,),
        in_specs=[
            pl.BlockSpec((tm, d_in), lambda i: (i, 0)),                   # x rows
            pl.BlockSpec((d_in, d_out), lambda i: (0, 0), **const_kw),    # weights
            pl.BlockSpec((d_out, m), lambda i: (0, 0), **const_kw),       # adjacency
        ],
        out_specs=pl.BlockSpec((tm, m), lambda i: (i, 0)),
    )
    return pl.pallas_call(
        _gcn_kernel,
        out_shape=jax.ShapeDtypeStruct((n_pad, m), jnp.float32),
        grid_spec=grid_spec,
        compiler_params=pltpu.CompilerParams(
            dimension_semantics=("parallel",),
            vmem_limit_bytes=_vmem_limit_bytes(tm, d_in, d_out, m,
                                               single_buffer_consts),
        ),
    )


def graph_convolution(x, weights, adj, *, tm=256):
    """softmax((x @ weights) @ adj, axis=-1) as one fused Pallas TPU kernel."""
    N, d_in = x.shape
    d_in_w, d_out = weights.shape
    d_out_a, M = adj.shape
    assert d_in == d_in_w and d_out == d_out_a

    # MXU-friendly operands: bf16 in, f32 accumulate (also halves DMA bytes).
    xb = x.astype(jnp.bfloat16)
    wb = weights.astype(jnp.bfloat16)
    ab = adj.astype(jnp.bfloat16)

    # Row tile: multiple of 128, but never wider than the (row-padded) data.
    tm = max(128, 128 * (tm // 128))
    tm = min(tm, _round_up(N, 128))

    # Pad rows up to a tile multiple instead of asserting divisibility; padded
    # rows are all-zero and sliced off after the kernel.
    n_pad = _round_up(N, tm)
    if n_pad != N:
        xb = jnp.pad(xb, ((0, n_pad - N), (0, 0)))

    single_buffer = hasattr(pl, "Buffered")
    try:
        out = _build_call(n_pad, d_in, d_out, M, tm, single_buffer)(xb, wb, ab)
    except Exception:
        if not single_buffer:
            raise
        # Fallback: default double-buffering for the grid-invariant operands
        # (identical numerics, slightly more VMEM).
        out = _build_call(n_pad, d_in, d_out, M, tm, False)(xb, wb, ab)

    return out[:N] if n_pad != N else out


if __name__ == "__main__":
    # Small, module-consistent problem with lane-dense dims and a ragged row
    # count (N=300 exercises the padded-tail path with tm=256).
    N, D_IN, D_OUT, M = 300, 64, 128, 256

    key = jax.random.PRNGKey(0)
    k_x, k_w, k_a = jax.random.split(key, 3)

    # Module __init__: weights ~ U(-dev, dev), dev = 1/sqrt(output_dimension);
    # bias=0 -> no bias parameter.
    dev = 1.0 / math.sqrt(D_OUT)
    weights = jax.random.uniform(k_w, (D_IN, D_OUT), jnp.float32,
                                 minval=-dev, maxval=dev)
    x = jax.random.normal(k_x, (N, D_IN), jnp.float32)

    # Synthetic "normalized adjacency": nonnegative, row-normalized, [D_out, M].
    adj_raw = jax.random.uniform(k_a, (D_OUT, M), jnp.float32)
    adj = adj_raw / jnp.sum(adj_raw, axis=-1, keepdims=True)

    out = graph_convolution(x, weights, adj)
    out = jax.block_until_ready(out)

    # Reference with the same bf16-operand / f32-accumulate dtype flow the
    # kernel uses, so only the approx reciprocal / reduction order differ.
    xb = x.astype(jnp.bfloat16)
    wb = weights.astype(jnp.bfloat16)
    ab = adj.astype(jnp.bfloat16)
    h_ref = jnp.dot(xb, wb, preferred_element_type=jnp.float32)
    z_ref = jnp.dot(h_ref.astype(jnp.bfloat16), ab,
                    preferred_element_type=jnp.float32)
    ref = jax.nn.softmax(z_ref, axis=-1)

    assert out.shape == (N, M) and out.dtype == jnp.float32
    assert not bool(jnp.any(jnp.isnan(out)))
    max_rel = float(jnp.max(jnp.abs(out - ref) / (jnp.abs(ref) + 1e-6)))
    assert jnp.allclose(out, ref, rtol=2e-2, atol=1e-6), max_rel
    assert jnp.allclose(jnp.sum(out, axis=-1), 1.0, atol=1e-2)

    print("KERNEL_OK")
</pallas_src>

<mosaic_0001>
module attributes {stable_mosaic.version = 11 : i64} {
  func.func @_gcn_kernel(%arg0: i32, %arg1: memref<256x64xbf16, #tpu.memory_space<vmem>>, %arg2: memref<64x128xbf16, #tpu.memory_space<vmem>>, %arg3: memref<128x256xbf16, #tpu.memory_space<vmem>>, %arg4: memref<256x256xf32, #tpu.memory_space<vmem>>) attributes {dimension_semantics = [#tpu.dimension_semantics<parallel>], iteration_bounds = array<i64: 2>, scalar_prefetch = 0 : i64, scratch_operands = 0 : i64, tpu.core_type = #tpu.core_type<tc>, window_params = [{transform_indices = @transform_0, window_bounds = array<i64: 256, 64>}, {pipeline_mode = #tpu.pipeline_mode<synchronous>, transform_indices = @transform_1, window_bounds = array<i64: 64, 128>}, {pipeline_mode = #tpu.pipeline_mode<synchronous>, transform_indices = @transform_2, window_bounds = array<i64: 128, 256>}, {transform_indices = @transform_3, window_bounds = array<i64: 256, 256>}]} {
    %c0 = arith.constant 0 : index
    %c0_0 = arith.constant 0 : index
    %0 = vector.load %arg1[%c0, %c0_0] : memref<256x64xbf16, #tpu.memory_space<vmem>>, vector<256x64xbf16>
    %c0_1 = arith.constant 0 : index
    %c0_2 = arith.constant 0 : index
    %1 = vector.load %arg2[%c0_1, %c0_2] : memref<64x128xbf16, #tpu.memory_space<vmem>>, vector<64x128xbf16>
    %cst = arith.constant dense<0.000000e+00> : vector<256x128xf32>
    %2 = tpu.matmul %0, %1, %cst {dimension_numbers = #tpu.dot_dimension_numbers<[1], [0], [0], [1], [0, 0, 1, 1], [], []>} : vector<256x64xbf16>, vector<64x128xbf16>, vector<256x128xf32> -> vector<256x128xf32>
    %3 = arith.truncf %2 : vector<256x128xf32> to vector<256x128xbf16>
    %c0_3 = arith.constant 0 : index
    %c0_4 = arith.constant 0 : index
    %4 = vector.load %arg3[%c0_3, %c0_4] : memref<128x256xbf16, #tpu.memory_space<vmem>>, vector<128x256xbf16>
    %cst_5 = arith.constant dense<0.000000e+00> : vector<256x256xf32>
    %5 = tpu.matmul %3, %4, %cst_5 {dimension_numbers = #tpu.dot_dimension_numbers<[1], [0], [0], [1], [0, 0, 1, 1], [], []>} : vector<256x128xbf16>, vector<128x256xbf16>, vector<256x256xf32> -> vector<256x256xf32>
    %cst_6 = arith.constant dense<0xFF800000> : vector<256xf32>
    %6 = vector.multi_reduction <maximumf>, %5, %cst_6 [1] : vector<256x256xf32> to vector<256xf32>
    %7 = vector.shape_cast %6 : vector<256xf32> to vector<256x1xf32>
    %8 = vector.broadcast %7 : vector<256x1xf32> to vector<256x256xf32>
    %9 = arith.subf %5, %8 : vector<256x256xf32>
    %10 = math.exp %9 : vector<256x256xf32>
    %cst_7 = arith.constant dense<0.000000e+00> : vector<256xf32>
    %11 = vector.multi_reduction <add>, %10, %cst_7 [1] : vector<256x256xf32> to vector<256xf32>
    %12 = vector.shape_cast %11 : vector<256xf32> to vector<256x1xf32>
    %13 = tpu.reciprocal %12 {approx = true} : vector<256x1xf32> -> vector<256x1xf32>
    %14 = vector.broadcast %13 : vector<256x1xf32> to vector<256x256xf32>
    %15 = arith.mulf %10, %14 : vector<256x256xf32>
    %c0_8 = arith.constant 0 : index
    %c0_9 = arith.constant 0 : index
    %16 = vector.load %arg4[%c0_8, %c0_9] : memref<256x256xf32, #tpu.memory_space<vmem>>, vector<256x256xf32>
    tpu.vector_store %arg4[%c0_8, %c0_9], %15 {strides = array<i32>} : memref<256x256xf32, #tpu.memory_space<vmem>>, vector<256x256xf32>,
    return
  }
  func.func @transform_0(%arg0: i32) -> (i32, i32) {
    %c0_i32 = arith.constant 0 : i32
    %c0_i32_0 = arith.constant 0 : i32
    return %arg0, %c0_i32 : i32, i32
  }
  func.func @transform_1(%arg0: i32) -> (i32, i32) {
    %c0_i32 = arith.constant 0 : i32
    %c0_i32_0 = arith.constant 0 : i32
    %c0_i32_1 = arith.constant 0 : i32
    return %c0_i32, %c0_i32_0 : i32, i32
  }
  func.func @transform_2(%arg0: i32) -> (i32, i32) {
    %c0_i32 = arith.constant 0 : i32
    %c0_i32_0 = arith.constant 0 : i32
    %c0_i32_1 = arith.constant 0 : i32
    return %c0_i32, %c0_i32_0 : i32, i32
  }
  func.func @transform_3(%arg0: i32) -> (i32, i32) {
    %c0_i32 = arith.constant 0 : i32
    %c0_i32_0 = arith.constant 0 : i32
    return %arg0, %c0_i32 : i32, i32
  }
}

module attributes {stable_mosaic.version = 11 : i64} {
  func.func @_gcn_kernel(%arg0: i32, %arg1: memref<256x64xbf16, #tpu.memory_space<vmem>>, %arg2: memref<64x128xbf16, #tpu.memory_space<vmem>>, %arg3: memref<128x256xbf16, #tpu.memory_space<vmem>>, %arg4: memref<256x256xf32, #tpu.memory_space<vmem>>) attributes {dimension_semantics = [#tpu.dimension_semantics<parallel>], iteration_bounds = array<i64: 2>, scalar_prefetch = 0 : i64, scratch_operands = 0 : i64, tpu.core_type = #tpu.core_type<tc>, window_params = [{transform_indices = @transform_0, window_bounds = array<i64: 256, 64>}, {pipeline_mode = #tpu.pipeline_mode<synchronous>, transform_indices = @transform_1, window_bounds = array<i64: 64, 128>}, {pipeline_mode = #tpu.pipeline_mode<synchronous>, transform_indices = @transform_2, window_bounds = array<i64: 128, 256>}, {transform_indices = @transform_3, window_bounds = array<i64: 256, 256>}]} {
    %c0 = arith.constant 0 : index
    %c0_0 = arith.constant 0 : index
    %0 = vector.load %arg1[%c0, %c0_0] : memref<256x64xbf16, #tpu.memory_space<vmem>>, vector<256x64xbf16>
    %c0_1 = arith.constant 0 : index
    %c0_2 = arith.constant 0 : index
    %1 = vector.load %arg2[%c0_1, %c0_2] : memref<64x128xbf16, #tpu.memory_space<vmem>>, vector<64x128xbf16>
    %cst = arith.constant dense<0.000000e+00> : vector<256x128xf32>
    %2 = tpu.matmul %0, %1, %cst {dimension_numbers = #tpu.dot_dimension_numbers<[1], [0], [0], [1], [0, 0, 1, 1], [], []>} : vector<256x64xbf16>, vector<64x128xbf16>, vector<256x128xf32> -> vector<256x128xf32>
    %3 = arith.truncf %2 : vector<256x128xf32> to vector<256x128xbf16>
    %c0_3 = arith.constant 0 : index
    %c0_4 = arith.constant 0 : index
    %4 = vector.load %arg3[%c0_3, %c0_4] : memref<128x256xbf16, #tpu.memory_space<vmem>>, vector<128x256xbf16>
    %cst_5 = arith.constant dense<0.000000e+00> : vector<256x256xf32>
    %5 = tpu.matmul %3, %4, %cst_5 {dimension_numbers = #tpu.dot_dimension_numbers<[1], [0], [0], [1], [0, 0, 1, 1], [], []>} : vector<256x128xbf16>, vector<128x256xbf16>, vector<256x256xf32> -> vector<256x256xf32>
    %cst_6 = arith.constant dense<0xFF800000> : vector<256xf32>
    %6 = vector.multi_reduction <maximumf>, %5, %cst_6 [1] : vector<256x256xf32> to vector<256xf32>
    %7 = vector.shape_cast %6 : vector<256xf32> to vector<256x1xf32>
    %8 = vector.broadcast %7 : vector<256x1xf32> to vector<256x256xf32>
    %9 = arith.subf %5, %8 : vector<256x256xf32>
    %10 = math.exp %9 : vector<256x256xf32>
    %cst_7 = arith.constant dense<0.000000e+00> : vector<256xf32>
    %11 = vector.multi_reduction <add>, %10, %cst_7 [1] : vector<256x256xf32> to vector<256xf32>
    %12 = vector.shape_cast %11 : vector<256xf32> to vector<256x1xf32>
    %13 = tpu.reciprocal %12 {approx = true} : vector<256x1xf32> -> vector<256x1xf32>
    %14 = vector.broadcast %13 : vector<256x1xf32> to vector<256x256xf32>
    %15 = arith.mulf %10, %14 : vector<256x256xf32>
    %c0_8 = arith.constant 0 : index
    %c0_9 = arith.constant 0 : index
    %16 = vector.load %arg4[%c0_8, %c0_9] : memref<256x256xf32, #tpu.memory_space<vmem>>, vector<256x256xf32>
    tpu.vector_store %arg4[%c0_8, %c0_9], %15 {strides = array<i32>} : memref<256x256xf32, #tpu.memory_space<vmem>>, vector<256x256xf32>,
    return
  }
  func.func @transform_0(%arg0: i32) -> (i32, i32) {
    %c0_i32 = arith.constant 0 : i32
    %c0_i32_0 = arith.constant 0 : i32
    return %arg0, %c0_i32 : i32, i32
  }
  func.func @transform_1(%arg0: i32) -> (i32, i32) {
    %c0_i32 = arith.constant 0 : i32
    %c0_i32_0 = arith.constant 0 : i32
    %c0_i32_1 = arith.constant 0 : i32
    return %c0_i32, %c0_i32_0 : i32, i32
  }
  func.func @transform_2(%arg0: i32) -> (i32, i32) {
    %c0_i32 = arith.constant 0 : i32
    %c0_i32_0 = arith.constant 0 : i32
    %c0_i32_1 = arith.constant 0 : i32
    return %c0_i32, %c0_i32_0 : i32, i32
  }
  func.func @transform_3(%arg0: i32) -> (i32, i32) {
    %c0_i32 = arith.constant 0 : i32
    %c0_i32_0 = arith.constant 0 : i32
    return %arg0, %c0_i32 : i32, i32
  }
}

</mosaic_0001>

<bundles_post_ra>
// kernel: tpu_custom_call.1
= control target key start
LH: loop header
LB: loop body
LE: loop exit
PB: predicated region body
PF: predicated region fallthrough
CT: control target
= control target key end

     0   :  { %8 = vsyncpa [#allocation3], 0  ;;  %s2811_s0 = inlined_call_operand.vmem [shape: bf16[512,64], index: 0, kind: input, shape index: {}]   ;;  %s2812_s1 = inlined_call_operand.vmem [shape: bf16[64,128], index: 1, kind: input, shape index: {}]   ;;  %s2813_s2 = inlined_call_operand.vmem [shape: bf16[128,256], index: 2, kind: input, shape index: {}]   ;;  %s2814_s3 = inlined_call_operand.hbm [shape: f32[512,256], index: 3, kind: output, shape index: {}]  }
   0x1   :  { %10 = vsyncpa [#allocation3 + $0x1], 0  ;;  %s1918_s12 = smov 0   ;;  %s1920_s13 = smov 0  }
   0x2   :  { %s1922_s14 = smov 0   ;;  %s1924_s15 = smov 0  }
   0x3 LB: > { %s1939_s16 = sadd.s32 4294967295, %s1894_s15   ;;  %s1368_s17 = sadd.s32 4294967294, %s1894_s15   ;;  %s1894_s15 = sphi %s1924_s15, %s2841_s15   ;;  %s1890_s14 = sphi %s1922_s14, %s2840_s14   ;;  %s1886_s13 = sphi %s1920_s13, %s2839_s13   ;;  %s1882_s12 = sphi %s1918_s12, %s2838_s12  }
   0x4   : > { %s1943_s18 = sadd.s32 1, %s1894_s15   ;;  %s91_s19 = sadd.s32 1, %s1890_s14 }
   0x5   : > { %s88_s20 = ssub.s32 %s1894_s15, %s1943_s18  ;;  %p101_p0 = scmp.ne.s32.totalorder %s1890_s14, %s1886_s13 }
   0x6   : > { %p89_p1 = scmp.eq.s32.totalorder %s88_s20, 0  ;;  %p102_p2 = scmp.eq.s32.totalorder %s1939_s16, 1 }
   0x7   : > { %p107_p3 = scmp.ne.s32.totalorder %s1886_s13, %s1882_s12  ;;  %p108_p4 = scmp.eq.s32.totalorder %s1368_s17, 1 }
   0x8   : > { %s1954_s21 = scalar_select %p89_p1, %s1890_s14, %s91_s19  }
   0x9   : > { %p1956_p5 = por %p102_p2, %p101_p0  ;;  %p1960_p6 = por %p108_p4, %p107_p3 }
   0xa   : > { %p1371_p7 = scmp.ge.s32.totalorder %s1894_s15, 1  ;;  %p141_p8 = scmp.lt.s32.totalorder %s1894_s15, 3 }
   0xc   : > { %p142_p9 = pnand %p1371_p7, %p141_p8 }
   0xe   : > { %145 = sbr.rel (%p142_p9) target bundleno = 879 (0x36f), region = 32 }
  0x13   : > { %v1560_v0 = vld [vmem:[%s2812_s1 + $0x18] sm:$0xff]  ;;  %s1373_s26 = sshll.u32 %s1939_s16, 5  ;;  %v1559_v1 = vld [vmem:[%s2812_s1 + $0x10] sm:$0xff]  ;;  %v1558_v2 = vld [vmem:[%s2812_s1 + $0x8] sm:$0xff]  ;;  %vm317_vm0 = vcmask 523264   ;;  %s1578_s7 = sshll.u32 %s1939_s16, 9 }
  0x14   : > { %p166_p10 = scmp.lt.s32.totalorder %s1373_s26, 63  ;;  %370 = vmatpush.bf16.msra.mxu0 %v1560_v0  ;;  %1579 = vmatpush.bf16.msra.mxu3 %v1560_v0  ;;  %v1557_v3 = vld [vmem:[%s2812_s1] sm:$0xff]  ;;  %v1529_v9 = vld [vmem:[%s2813_s2 + $0x70] sm:$0xf]  ;;  %v1576_v10 = vld [vmem:[%s2813_s2 + $0x74] sm:$0xf0]  ;;  %s1302_s11 = scalar_lea.hbm %s2814_s3, %s1578_s7 }
  0x15   : > { %v1575_v11 = vld [vmem:[%s2813_s2 + $0x74] sm:$0xf]  ;;  %v1530_v12 = vor.u32 %v1576_v10, %v1529_v9  ;;  %v1531_v13 = vld [vmem:[%s2813_s2 + $0x78] sm:$0xf0]  ;;  %v1521_v14 = vld [vmem:[%s2813_s2 + $0x60] sm:$0xf] }
  0x16   : > { %s2843_s26 = smov (!%p166_p10, %s1373_s26), 63  ;;  %v1574_v15 = vld [vmem:[%s2813_s2 + $0x64] sm:$0xf0]  ;;  %v2012_v16 = vor.u32 %v1575_v11, %v1531_v13  ;;  %v1573_v17 = vld [vmem:[%s2813_s2 + $0x64] sm:$0xf]  ;;  %s1305_s19 = sshll.u32 %s1302_s11, 4  ;;  %s1306_s19 = int_to_ptr.hbm [resolvable:$true] %s1305_s19 }
  0x17   : > { %s1374_s4 = sshll.u32 %s2843_s26, 2  ;;  %v1523_v18 = vld [vmem:[%s2813_s2 + $0x68] sm:$0xf0]  ;;  %567 = vmatpush.bf16.msra.mxu1 %v1530_v12  ;;  %v1522_v19 = vor.u32 %v1574_v15, %v1521_v14  ;;  %v1513_v22 = vld [vmem:[%s2813_s2 + $0x50] sm:$0xf]  ;;  %s1846_s20 = sshra.s32 %s1306_s19, 4  ;;  %s1847_s20 = int_to_ptr.hbm [resolvable:$true] %s1846_s20 }
  0x18   : > { %371 = vmatpush.bf16.msra.mxu0 %v1559_v1  ;;  %1580 = vmatpush.bf16.msra.mxu3 %v1559_v1  ;;  %s1982_s9 = scalar_lea.vmem %s2811_s0, %s1374_s4  ;;  %v2021_v20 = vor.u32 %v1573_v17, %v1523_v18  ;;  %v1572_v23 = vld [vmem:[%s2813_s2 + $0x54] sm:$0xf0]  ;;  %v1571_v24 = vld [vmem:[%s2813_s2 + $0x54] sm:$0xf]  ;;  %v1515_v26 = vld [vmem:[%s2813_s2 + $0x58] sm:$0xf0]  ;;  %p1853_p0 = scmp.lt.s32.totalorder %s1847_s20, %s2814_s3 }
  0x19   : > { %v1541_v4 = vld [vmem:[%s1982_s9] sm:$0xff]  ;;  %v1542_v5 = vld [vmem:[%s1982_s9 + $0x8] sm:$0xff]  ;;  %v1543_v6 = vld [vmem:[%s1982_s9 + $0x10] sm:$0xff]  ;;  %656 = vmatpush.bf16.msra.mxu2 %v2012_v16  ;;  %v1514_v25 = vor.u32 %v1572_v23, %v1513_v22  ;;  %v2038_v27 = vor.u32 %v1571_v24, %v1515_v26  ;;  %s1848_s24 = scalar_lea.hbm %s1847_s20, 512  ;;  %s1852_s27 = scalar_lea.hbm %s2814_s3, 1024 }
  0x1a   : > { %v1544_v7 = vld [vmem:[%s1982_s9 + $0x18] sm:$0xff]  ;;  %v1545_v8 = vld [vmem:[%s1982_s9 + $0x20] sm:$0xff]  ;;  %v1546_v21 = vld [vmem:[%s1982_s9 + $0x28] sm:$0xff]  ;;  %p1849_p11 = scmp.ne.s32.totalorder %s1847_s20, %s1848_s24  ;;  %p1854_p1 = scmp.lt.s32.totalorder %s1852_s27, %s1848_s24 }
  0x1b   : > { %568 = vmatpush.bf16.msra.mxu1 %v1522_v19  ;;  %v1505_v28 = vld [vmem:[%s2813_s2 + $0x40] sm:$0xf]  ;;  %v1570_v29 = vld [vmem:[%s2813_s2 + $0x44] sm:$0xf0]  ;;  %v1569_v30 = vld [vmem:[%s2813_s2 + $0x44] sm:$0xf] }
  0x1c   : > { %372 = vmatpush.bf16.msra.mxu0 %v1558_v2  ;;  %1581 = vmatpush.bf16.msra.mxu3 %v1558_v2  ;;  %v1506_v31 = vor.u32 %v1570_v29, %v1505_v28  ;;  %v1507_v32 = vld [vmem:[%s2813_s2 + $0x48] sm:$0xf0]  ;;  %v1497_v34 = vld [vmem:[%s2813_s2 + $0x30] sm:$0xf]  ;;  %v1568_v35 = vld [vmem:[%s2813_s2 + $0x34] sm:$0xf0]  ;;  %p1850_p12 = pnand %p1849_p11, %p1956_p5  ;;  %p1855_p2 = por %p1854_p1, %p1853_p0 }
  0x1d   : > { %657 = vmatpush.bf16.msra.mxu2 %v2021_v20  ;;  %v2053_v33 = vor.u32 %v1569_v30, %v1507_v32  ;;  %v1567_v36 = vld [vmem:[%s2813_s2 + $0x34] sm:$0xf]  ;;  %v1499_v37 = vld [vmem:[%s2813_s2 + $0x38] sm:$0xf0]  ;;  %v1498_v38 = vor.u32 %v1568_v35, %v1497_v34  ;;  %v1489_v40 = vld [vmem:[%s2813_s2 + $0x20] sm:$0xf] }
  0x1e   : > { %v2068_v39 = vor.u32 %v1567_v36, %v1499_v37  ;;  %v1566_v41 = vld [vmem:[%s2813_s2 + $0x24] sm:$0xf0]  ;;  %v1565_v42 = vld [vmem:[%s2813_s2 + $0x24] sm:$0xf]  ;;  %v1491_v44 = vld [vmem:[%s2813_s2 + $0x28] sm:$0xf0]  ;;  %p1851_p13 = pneg %p1850_p12 }
  0x1f   : > { %569 = vmatpush.bf16.msra.mxu1 %v1514_v25  ;;  %v1490_v43 = vor.u32 %v1566_v41, %v1489_v40  ;;  %v1547_v45 = vld [vmem:[%s1982_s9 + $0x30] sm:$0xff]  ;;  %v1494_v46 = vor.u32 %v1565_v42, %v1491_v44  ;;  %v1564_v48 = vld [vmem:[%s2813_s2 + $0x14] sm:$0xf0]  ;;  %v1483_v51 = vld [vmem:[%s2813_s2 + $0x18] sm:$0xf0] }
  0x20   : > { %373 = vmatpush.bf16.msra.mxu0 %v1557_v3  ;;  %1582 = vmatpush.bf16.msra.mxu3 %v1557_v3  ;;  %v1481_v47 = vld [vmem:[%s2813_s2 + $0x10] sm:$0xf]  ;;  %v1563_v49 = vld [vmem:[%s2813_s2 + $0x14] sm:$0xf]  ;;  %v1473_v53 = vld [vmem:[%s2813_s2] sm:$0xf]  ;;  %p1856_p3 = pnand %p1855_p2, %p1851_p13 }
  0x21   : > { %658 = vmatpush.bf16.msra.mxu2 %v2038_v27  ;;  %v1482_v50 = vor.u32 %v1564_v48, %v1481_v47  ;;  %v1486_v52 = vor.u32 %v1563_v49, %v1483_v51  ;;  %v1562_v54 = vld [vmem:[%s2813_s2 + $0x4] sm:$0xf0]  ;;  %v1561_v55 = vld [vmem:[%s2813_s2 + $0x4] sm:$0xf]  ;;  %v1475_v57 = vld [vmem:[%s2813_s2 + $0x8] sm:$0xf0] }
  0x22   : > { %v1474_v56 = vor.u32 %v1562_v54, %v1473_v53  ;;  %v1478_v58 = vor.u32 %v1561_v55, %v1475_v57  ;;  %v1548_v59 = vld [vmem:[%s1982_s9 + $0x38] sm:$0xff]  ;;  %v1549_v60 = vld [vmem:[%s1982_s9 + $0x40] sm:$0xff]  ;;  %v1550_v0 = vld [vmem:[%s1982_s9 + $0x48] sm:$0xff] }
  0x23   : > { %1455 = vmatmul.msk.bf16.vlgmr.msra.gmra.mxu0 %vm317_vm0, %v1541_v4  ;;  %570 = vmatpush.bf16.msra.mxu1 %v1506_v31  ;;  %v1551_v4 = vld [vmem:[%s1982_s9 + $0x50] sm:$0xff]  ;;  %v1552_v9 = vld [vmem:[%s1982_s9 + $0x58] sm:$0xff]  ;;  %v1553_v14 = vld [vmem:[%s1982_s9 + $0x60] sm:$0xff] }
  0x24   : > { %1583 = vmatpush.bf16.msrb.mxu3 %v1530_v12  ;;  %v1555_v11 = vld [vmem:[%s1982_s9 + $0x70] sm:$0xff] }
  0x25   : > { %659 = vmatpush.bf16.msra.mxu2 %v2053_v33 }
  0x27   : > { %571 = vmatpush.bf16.msra.mxu1 %v1498_v38 }
  0x28   : > { %1584 = vmatpush.bf16.msrb.mxu3 %v1522_v19 }
  0x29   : > { %660 = vmatpush.bf16.msra.mxu2 %v2068_v39 }
  0x2b   : > { %572 = vmatpush.bf16.msra.mxu1 %v1490_v43 }
  0x2c   : > { %1585 = vmatpush.bf16.msrb.mxu3 %v1514_v25 }
  0x2d   : > { %661 = vmatpush.bf16.msra.mxu2 %v1494_v46 }
  0x2f   : > { %573 = vmatpush.bf16.msra.mxu1 %v1482_v50 }
  0x30   : > { %1586 = vmatpush.bf16.msrb.mxu3 %v1506_v31 }
  0x31   : > { %662 = vmatpush.bf16.msra.mxu2 %v1486_v52 }
  0x33   : > { %1456 = vmatmul.msk.bf16.gmra.mxu0 %vm317_vm0, %v1542_v5  ;;  %574 = vmatpush.bf16.msra.mxu1 %v1474_v56 }
  0x34   : > { %1587 = vmatpush.bf16.msrb.mxu3 %v1498_v38 }
  0x35   : > { %663 = vmatpush.bf16.msra.mxu2 %v1478_v58 }
  0x38   : > { %1588 = vmatpush.bf16.msrb.mxu3 %v1490_v43 }
  0x3c   : > { %1589 = vmatpush.bf16.msrb.mxu3 %v1482_v50 }
  0x40   : > { %1590 = vmatpush.bf16.msrb.mxu3 %v1474_v56 }
  0x43   : > { %1457 = vmatmul.msk.bf16.gmra.mxu0 %vm317_vm0, %v1543_v6  ;;  %v1554_v6 = vld [vmem:[%s1982_s9 + $0x68] sm:$0xff] }
  0x44   : > { %1468 = vmatmul.msk.bf16.vlgmr.msra.gmra.mxu3 %vm317_vm0, %v1554_v6 }
  0x45   : > { %1591 = vmatpush.bf16.msra.mxu3 %v2012_v16  ;;  %v1556_v16 = vld [vmem:[%s1982_s9 + $0x78] sm:$0xff]  ;;  %s162_s9 = sand.u32 1, %s1886_s13  }
  0x46   : > { %s1372_s5 = sshll.u32 %s162_s9, 9  ;;  %s1290_s16 = scalar_lea.sflag [#allocation3], %s162_s9 }
  0x47   : > { %s2411_s6 = scalar_lea.vmem [#allocation2], %s1372_s5 }
  0x48   : > { %s1303_s17 = sshll.u32 %s2411_s6, 4  ;;  %s1304_s17 = int_to_ptr.vmem [resolvable:$true] %s1303_s17 }
  0x49   : > { %1592 = vmatpush.bf16.msra.mxu3 %v2021_v20 }
  0x4d   : > { %1593 = vmatpush.bf16.msra.mxu3 %v2038_v27 }
  0x51   : > { %1594 = vmatpush.bf16.msra.mxu3 %v2053_v33 }
  0x53   : > { %1458 = vmatmul.msk.bf16.gmra.mxu0 %vm317_vm0, %v1544_v7 }
  0x54   : > { %1469 = vmatmul.msk.bf16.gmra.mxu3 %vm317_vm0, %v1555_v11 }
  0x55   : > { %1595 = vmatpush.bf16.msra.mxu3 %v2068_v39 }
  0x59   : > { %1596 = vmatpush.bf16.msra.mxu3 %v1494_v46 }
  0x5d   : > { %1597 = vmatpush.bf16.msra.mxu3 %v1486_v52 }
  0x61   : > { %1598 = vmatpush.bf16.msra.mxu3 %v1478_v58 }
  0x63   : > { %1459 = vmatmul.msk.bf16.gmra.mxu0 %vm317_vm0, %v1545_v8 }
  0x64   : > { %1470 = vmatmul.msk.bf16.gmra.mxu3 %vm317_vm0, %v1556_v16 }
  0x73   : > { %1460 = vmatmul.msk.bf16.gmra.mxu0 %vm317_vm0, %v1546_v21 }
  0x83   : > { %1461 = vmatmul.msk.bf16.gmra.mxu0 %vm317_vm0, %v1547_v45 }
  0x93   : > { %1462 = vmatmul.msk.bf16.gmra.mxu0 %vm317_vm0, %v1548_v59 }
  0xa0   : > { %v375_v61 = vpop.f32.mrf.mxu0 }
  0xa3   : > { %1463 = vmatmul.msk.bf16.gmra.mxu0 %vm317_vm0, %v1549_v60 }
  0xa8   : > { %v377_v62 = vpop.f32.mrf.mxu0 }
  0xa9   : > { %v455_v63 = vpack.c.bf16 %v377_v62, %v375_v61 }
  0xab   : > { %575 = vmatmul.bf16.vlgmr.msra.gmra.mxu1 %v455_v63  ;;  %664 = vmatmul.bf16.vlgmr.msra.gmra.mxu2 %v455_v63 }
  0xb0   : > { %v380_v1 = vpop.f32.mrf.mxu0 }
  0xb3   : > { %1464 = vmatmul.msk.bf16.gmra.mxu0 %vm317_vm0, %v1550_v0 }
  0xb8   : > { %v382_v2 = vpop.f32.mrf.mxu0 }
  0xb9   : > { %v456_v3 = vpack.c.bf16 %v382_v2, %v380_v1 }
  0xbb   : > { %580 = vmatmul.bf16.gmra.mxu1 %v456_v3  ;;  %669 = vmatmul.bf16.gmra.mxu2 %v456_v3 }
  0xc0   : > { %v385_v5 = vpop.f32.mrf.mxu0 }
  0xc3   : > { %1465 = vmatmul.msk.bf16.gmra.mxu0 %vm317_vm0, %v1551_v4 }
  0xc7   : > { %v440_v63 = vpop.f32.mrf.mxu3 }
  0xc8   : > { %v387_v7 = vpop.f32.mrf.mxu0 }
  0xc9   : > { %v457_v8 = vpack.c.bf16 %v387_v7, %v385_v5 }
  0xcb   : > { %585 = vmatmul.bf16.gmra.mxu1 %v457_v8  ;;  %674 = vmatmul.bf16.gmra.mxu2 %v457_v8 }
  0xcf   : > { %v442_v6 = vpop.f32.mrf.mxu3 }
  0xd0   : > { %v390_v10 = vpop.f32.mrf.mxu0 }
  0xd3   : > { %1466 = vmatmul.msk.bf16.gmra.mxu0 %vm317_vm0, %v1552_v9 }
  0xd7   : > { %v445_v11 = vpop.f32.mrf.mxu3 }
  0xd8   : > { %v392_v12 = vpop.f32.mrf.mxu0 }
  0xd9   : > { %v458_v13 = vpack.c.bf16 %v392_v12, %v390_v10 }
  0xdb   : > { %590 = vmatmul.bf16.gmra.mxu1 %v458_v13  ;;  %679 = vmatmul.bf16.gmra.mxu2 %v458_v13  ;;  %v2194_v13 = vpack.c.bf16 %v442_v6, %v440_v63 }
  0xe0   : > { %v395_v15 = vpop.f32.mrf.mxu0 }
  0xe3   : > { %1467 = vmatmul.msk.bf16.gmra.mxu0 %vm317_vm0, %v1553_v14 }
  0xe8   : > { %v397_v17 = vpop.f32.mrf.mxu0 }
  0xe9   : > { %v459_v18 = vpack.c.bf16 %v397_v17, %v395_v15  ;;  %v447_v17 = vpop.f32.mrf.mxu3 }
  0xeb   : > { %595 = vmatmul.bf16.gmra.mxu1 %v459_v18  ;;  %684 = vmatmul.bf16.gmra.mxu2 %v459_v18 }
  0xf0   : > { %v400_v19 = vpop.f32.mrf.mxu0 }
  0xf8   : > { %v402_v20 = vpop.f32.mrf.mxu0 }
  0xf9   : > { %v460_v21 = vpack.c.bf16 %v402_v20, %v400_v19 }
  0xfb   : > { %600 = vmatmul.bf16.gmra.mxu1 %v460_v21  ;;  %689 = vmatmul.bf16.gmra.mxu2 %v460_v21  ;;  %v2209_v21 = vpack.c.bf16 %v447_v17, %v445_v11 }
 0x100   : > { %v405_v22 = vpop.f32.mrf.mxu0 }
 0x108   : > { %v407_v23 = vpop.f32.mrf.mxu0 }
 0x109   : > { %v461_v24 = vpack.c.bf16 %v407_v23, %v405_v22  ;;  %v450_v22 = vpop.f32.mrf.mxu3 }
 0x10b   : > { %605 = vmatmul.bf16.gmra.mxu1 %v461_v24  ;;  %694 = vmatmul.bf16.gmra.mxu2 %v461_v24 }
 0x110   : > { %v410_v25 = vpop.f32.mrf.mxu0 }
 0x118   : > { %v412_v26 = vpop.f32.mrf.mxu0 }
 0x119   : > { %v462_v27 = vpack.c.bf16 %v412_v26, %v410_v25  ;;  %v452_v26 = vpop.f32.mrf.mxu3 }
 0x11b   : > { %610 = vmatmul.bf16.gmra.mxu1 %v462_v27  ;;  %699 = vmatmul.bf16.gmra.mxu2 %v462_v27 }
 0x120   : > { %v415_v28 = vpop.f32.mrf.mxu0 }
 0x128   : > { %v417_v29 = vpop.f32.mrf.mxu0  ;;  %v2132_v30 = vpop.f32.mrf.mxu1 }
 0x129   : > { %v463_v31 = vpack.c.bf16 %v417_v29, %v415_v28 }
 0x12b   : > { %615 = vmatmul.bf16.gmra.mxu1 %v463_v31  ;;  %704 = vmatmul.bf16.gmra.mxu2 %v463_v31  ;;  %v2224_v31 = vpack.c.bf16 %v452_v26, %v450_v22 }
 0x12e   : > { %v2134_v32 = vpop.f32.mrf.mxu2 }
 0x12f   : > { %v745_v33 = vmax.f32 %v2132_v30, %v2134_v32 }
 0x130   : > { %v420_v34 = vpop.f32.mrf.mxu0  ;;  %v2138_v35 = vpop.f32.mrf.mxu1 }
 0x131   : > { %746 = vmax.xlane.f32.xlu0 %v745_v33 }
 0x136   : > { %v2140_v36 = vpop.f32.mrf.mxu2 }
 0x137   : > { %v748_v37 = vmax.f32 %v2138_v35, %v2140_v36 }
 0x138   : > { %v422_v38 = vpop.f32.mrf.mxu0  ;;  %v2144_v39 = vpop.f32.mrf.mxu1 }
 0x139   : > { %v464_v40 = vpack.c.bf16 %v422_v38, %v420_v34  ;;  %749 = vmax.xlane.f32.xlu0 %v748_v37 }
 0x13b   : > { %620 = vmatmul.bf16.gmra.mxu1 %v464_v40  ;;  %709 = vmatmul.bf16.gmra.mxu2 %v464_v40 }
 0x13e   : > { %v2146_v41 = vpop.f32.mrf.mxu2 }
 0x13f   : > { %v751_v42 = vmax.f32 %v2144_v39, %v2146_v41 }
 0x140   : > { %v425_v43 = vpop.f32.mrf.mxu0  ;;  %v2150_v44 = vpop.f32.mrf.mxu1 }
 0x141   : > { %752 = vmax.xlane.f32.xlu1 %v751_v42 }
 0x146   : > { %v2152_v45 = vpop.f32.mrf.mxu2 }
 0x147   : > { %v754_v46 = vmax.f32 %v2150_v44, %v2152_v45 }
 0x148   : > { %v427_v47 = vpop.f32.mrf.mxu0  ;;  %v2156_v48 = vpop.f32.mrf.mxu1 }
 0x149   : > { %v465_v49 = vpack.c.bf16 %v427_v47, %v425_v43  ;;  %755 = vmax.xlane.f32.xlu1 %v754_v46 }
 0x14b   : > { %625 = vmatmul.bf16.gmra.mxu1 %v465_v49  ;;  %714 = vmatmul.bf16.gmra.mxu2 %v465_v49 }
 0x14e   : > { %v2158_v50 = vpop.f32.mrf.mxu2 }
 0x14f   : > { %v757_v51 = vmax.f32 %v2156_v48, %v2158_v50 }
 0x150   : > { %v430_v52 = vpop.f32.mrf.mxu0  ;;  %v2162_v53 = vpop.f32.mrf.mxu1 }
 0x151   : > { %758 = vmax.xlane.f32.xlu2 %v757_v51 }
 0x156   : > { %v2164_v54 = vpop.f32.mrf.mxu2 }
 0x157   : > { %v760_v55 = vmax.f32 %v2162_v53, %v2164_v54 }
 0x158   : > { %v432_v56 = vpop.f32.mrf.mxu0  ;;  %v2168_v57 = vpop.f32.mrf.mxu1 }
 0x159   : > { %v466_v58 = vpack.c.bf16 %v432_v56, %v430_v52  ;;  %761 = vmax.xlane.f32.xlu2 %v760_v55 }
 0x15b   : > { %630 = vmatmul.bf16.gmra.mxu1 %v466_v58  ;;  %719 = vmatmul.bf16.gmra.mxu2 %v466_v58 }
 0x15e   : > { %v2170_v59 = vpop.f32.mrf.mxu2 }
 0x15f   : > { %v763_v60 = vmax.f32 %v2168_v57, %v2170_v59 }
 0x160   : > { %v435_v61 = vpop.f32.mrf.mxu0  ;;  %v2174_v62 = vpop.f32.mrf.mxu1 }
 0x161   : > { %764 = vmax.xlane.f32.xlu0 %v763_v60 }
 0x166   : > { %v2176_v0 = vpop.f32.mrf.mxu2 }
 0x167   : > { %v766_v1 = vmax.f32 %v2174_v62, %v2176_v0 }
 0x168   : > { %v437_v2 = vpop.f32.mrf.mxu0  ;;  %v2180_v3 = vpop.f32.mrf.mxu1 }
 0x169   : > { %v467_v4 = vpack.c.bf16 %v437_v2, %v435_v61  ;;  %767 = vmax.xlane.f32.xlu1 %v766_v1 }
 0x16b   : > { %635 = vmatmul.bf16.vlgmr.msrb.gmra.mxu3 %v467_v4 }
 0x16e   : > { %v2182_v5 = vpop.f32.mrf.mxu2 }
 0x16f   : > { %v769_v7 = vmax.f32 %v2180_v3, %v2182_v5 }
 0x170   : > { %v2186_v8 = vpop.f32.mrf.mxu1 }
 0x171   : > { %770 = vmax.xlane.f32.xlu2 %v769_v7 }
 0x176   : > { %v2188_v9 = vpop.f32.mrf.mxu2 }
 0x177   : > { %v772_v10 = vmax.f32 %v2186_v8, %v2188_v9 }
 0x178   : > { %v2192_v12 = vpop.f32.mrf.mxu1 }
 0x179   : > { %773 = vmax.xlane.f32.xlu0 %v772_v10 }
 0x17b   : > { %640 = vmatmul.bf16.gmra.mxu3 %v2194_v13 }
 0x17e   : > { %v2197_v14 = vpop.f32.mrf.mxu2 }
 0x17f   : > { %v775_v15 = vmax.f32 %v2192_v12, %v2197_v14 }
 0x180   : > { %v2201_v16 = vpop.f32.mrf.mxu1 }
 0x181   : > { %776 = vmax.xlane.f32.xlu1 %v775_v15 }
 0x186   : > { %v2203_v18 = vpop.f32.mrf.mxu2 }
 0x187   : > { %v778_v19 = vmax.f32 %v2201_v16, %v2203_v18 }
 0x188   : > { %v2207_v20 = vpop.f32.mrf.mxu1 }
 0x189   : > { %779 = vmax.xlane.f32.xlu2 %v778_v19 }
 0x18b   : > { %645 = vmatmul.bf16.gmra.mxu3 %v2209_v21 }
 0x18e   : > { %v2212_v23 = vpop.f32.mrf.mxu2 }
 0x18f   : > { %v781_v24 = vmax.f32 %v2207_v20, %v2212_v23 }
 0x190   : > { %v2216_v25 = vpop.f32.mrf.mxu1 }
 0x191   : > { %782 = vmax.xlane.f32.xlu0 %v781_v24 }
 0x196   : > { %v2218_v27 = vpop.f32.mrf.mxu2 }
 0x197   : > { %v784_v28 = vmax.f32 %v2216_v25, %v2218_v27 }
 0x198   : > { %v2222_v29 = vpop.f32.mrf.mxu1 }
 0x199   : > { %785 = vmax.xlane.f32.xlu1 %v784_v28 }
 0x19b   : > { %650 = vmatmul.bf16.gmra.mxu3 %v2224_v31 }
 0x19e   : > { %v2227_v33 = vpop.f32.mrf.mxu2 }
 0x19f   : > { %v787_v34 = vmax.f32 %v2222_v29, %v2227_v33 }
 0x1a0   : > { %v2231_v37 = vpop.f32.mrf.mxu1 }
 0x1a1   : > { %788 = vmax.xlane.f32.xlu2 %v787_v34 }
 0x1a4   : > { %v747_v38 = vpop.xlane.xlu0 %746 }
 0x1a5   : > { %v841_v40 = vsub.f32 %v2132_v30, %v747_v38  ;;  %v842_v42 = vsub.f32 %v2134_v32, %v747_v38 }
 0x1a6   : > { %v2235_v43 = vpop.f32.mrf.mxu2 }
 0x1a7   : > { %v905_v46 = vmul.f32 1.442695, %v841_v40  ;;  %v907_v47 = vmul.f32 1.442695, %v842_v42  ;;  %v790_v49 = vmax.f32 %v2231_v37, %v2235_v43 }
 0x1a8   : > { %v2239_v51 = vpop.f32.mrf.mxu1 }
 0x1a9   : > { %1640 = vpow2.f32 %v905_v46  ;;  %791 = vmax.xlane.f32.xlu0 %v790_v49 }
 0x1aa   : > { %1642 = vpow2.f32 %v907_v47 }
 0x1ab   : > { %724 = vmatmul.bf16.vlgmr.msra.gmra.mxu3 %v467_v4 }
 0x1ac   : > { %v750_v52 = vpop.xlane.xlu0 %749 }
 0x1ad   : > { %v843_v55 = vsub.f32 %v2138_v35, %v750_v52  ;;  %v844_v30 = vsub.f32 %v2140_v36, %v750_v52 }
 0x1ae   : > { %v2243_v56 = vpop.f32.mrf.mxu2 }
 0x1af   : > { %v2245_v32 = vpop.eup %1640  ;;  %v909_v58 = vmul.f32 1.442695, %v843_v55  ;;  %v911_v60 = vmul.f32 1.442695, %v844_v30  ;;  %v793_v61 = vmax.f32 %v2239_v51, %v2243_v56 }
 0x1b0   : > { %v2249_v63 = vpop.eup %1642  ;;  %v2251_v1 = vpop.f32.mrf.mxu1 }
 0x1b1   : > { %1644 = vpow2.f32 %v909_v58  ;;  %794 = vmax.xlane.f32.xlu1 %v793_v61  ;;  %v1033_v35 = vadd.f32 %v2249_v63, %v2245_v32 }
 0x1b2   : > { %1646 = vpow2.f32 %v911_v60 }
 0x1b3   : > { %1034 = vadd.xlane.f32.xlu2 %v1033_v35 }
 0x1b4   : > { %v753_v36 = vpop.xlane.xlu1 %752 }
 0x1b5   : > { %v845_v2 = vsub.f32 %v2144_v39, %v753_v36  ;;  %v846_v4 = vsub.f32 %v2146_v41, %v753_v36 }
 0x1b6   : > { %v2257_v6 = vpop.f32.mrf.mxu2 }
 0x1b7   : > { %v2259_v7 = vpop.eup %1644  ;;  %v913_v10 = vmul.f32 1.442695, %v845_v2  ;;  %v915_v11 = vmul.f32 1.442695, %v846_v4  ;;  %v796_v15 = vmax.f32 %v2251_v1, %v2257_v6 }
 0x1b8   : > { %v2263_v17 = vpop.eup %1646  ;;  %v2265_v19 = vpop.f32.mrf.mxu1 }
 0x1b9   : > { %1648 = vpow2.f32 %v913_v10  ;;  %v1036_v22 = vadd.f32 %v2263_v17, %v2259_v7 }
 0x1ba   : > { %1650 = vpow2.f32 %v915_v11 }
 0x1bb   : > { %1037 = vadd.xlane.f32.xlu0 %v1036_v22  ;;  %797 = vmax.xlane.f32.xlu2 %v796_v15 }
 0x1bc   : > { %729 = vmatmul.bf16.gmra.mxu3 %v2194_v13  ;;  %v756_v39 = vpop.xlane.xlu1 %755 }
 0x1bd   : > { %v847_v41 = vsub.f32 %v2150_v44, %v756_v39  ;;  %v848_v24 = vsub.f32 %v2152_v45, %v756_v39 }
 0x1be   : > { %v2272_v26 = vpop.f32.mrf.mxu2 }
 0x1bf   : > { %v2274_v28 = vpop.eup %1648  ;;  %v917_v34 = vmul.f32 1.442695, %v847_v41  ;;  %v919_v38 = vmul.f32 1.442695, %v848_v24  ;;  %v799_v40 = vmax.f32 %v2265_v19, %v2272_v26 }
 0x1c0   : > { %v2278_v42 = vpop.eup %1650  ;;  %v2280_v46 = vpop.f32.mrf.mxu1 }
 0x1c1   : > { %1652 = vpow2.f32 %v917_v34  ;;  %v1039_v13 = vadd.f32 %v2278_v42, %v2274_v28 }
 0x1c2   : > { %1654 = vpow2.f32 %v919_v38 }
 0x1c3   : > { %1040 = vadd.xlane.f32.xlu1 %v1039_v13  ;;  %800 = vmax.xlane.f32.xlu0 %v799_v40 }
 0x1c4   : > { %v759_v44 = vpop.xlane.xlu2 %758 }
 0x1c5   : > { %v849_v45 = vsub.f32 %v2156_v48, %v759_v44  ;;  %v850_v47 = vsub.f32 %v2158_v50, %v759_v44 }
 0x1c6   : > { %v2286_v49 = vpop.f32.mrf.mxu2 }
 0x1c7   : > { %v2288_v52 = vpop.eup %1652  ;;  %v921_v55 = vmul.f32 1.442695, %v849_v45  ;;  %v923_v30 = vmul.f32 1.442695, %v850_v47  ;;  %v802_v58 = vmax.f32 %v2280_v46, %v2286_v49 }
 0x1c8   : > { %v2292_v60 = vpop.eup %1654  ;;  %v2294_v61 = vpop.f32.mrf.mxu1 }
 0x1c9   : > { %2824 = vst [vmem:[#allocation5_spill] sm:$0xff] %v2294_v61  ;;  %1656 = vpow2.f32 %v921_v55  ;;  %v1042_v35 = vadd.f32 %v2292_v60, %v2288_v52 }
 0x1ca   : > { %1658 = vpow2.f32 %v923_v30 }
 0x1cb   : > { %1043 = vadd.xlane.f32.xlu2 %v1042_v35  ;;  %803 = vmax.xlane.f32.xlu1 %v802_v58 }
 0x1cc   : > { %734 = vmatmul.bf16.gmra.mxu3 %v2209_v21  ;;  %v762_v48 = vpop.xlane.xlu2 %761 }
 0x1cd   : > { %v851_v50 = vsub.f32 %v2162_v53, %v762_v48  ;;  %v852_v36 = vsub.f32 %v2164_v54, %v762_v48 }
 0x1ce   : > { %v2301_v2 = vpop.f32.mrf.mxu2 }
 0x1cf   : > { %2825 = vst [vmem:[#allocation6_spill] sm:$0xff] %v2301_v2  ;;  %v2303_v4 = vpop.eup %1656  ;;  %v925_v10 = vmul.f32 1.442695, %v851_v50  ;;  %v927_v11 = vmul.f32 1.442695, %v852_v36  ;;  %v805_v15 = vmax.f32 %v2294_v61, %v2301_v2 }
 0x1d0   : > { %v2307_v22 = vpop.eup %1658  ;;  %v2311_v39 = vpop.f32.mrf.mxu1 }
 0x1d1   : > { %1660 = vpow2.f32 %v925_v10  ;;  %v1045_v21 = vadd.f32 %v2307_v22, %v2303_v4 }
 0x1d2   : > { %1662 = vpow2.f32 %v927_v11 }
 0x1d3   : > { %1046 = vadd.xlane.f32.xlu0 %v1045_v21  ;;  %806 = vmax.xlane.f32.xlu2 %v805_v15 }
 0x1d4   : > { %v765_v53 = vpop.xlane.xlu0 %764 }
 0x1d5   : > { %v853_v54 = vsub.f32 %v2168_v57, %v765_v53  ;;  %v854_v41 = vsub.f32 %v2170_v59, %v765_v53 }
 0x1d6   : > { %v2315_v24 = vpop.f32.mrf.mxu2 }
 0x1d7   : > { %v2317_v34 = vpop.eup %1660  ;;  %v929_v38 = vmul.f32 1.442695, %v853_v54  ;;  %v931_v40 = vmul.f32 1.442695, %v854_v41  ;;  %v808_v13 = vmax.f32 %v2311_v39, %v2315_v24 }
 0x1d8   : > { %v2321_v44 = vpop.eup %1662  ;;  %v2325_v57 = vpop.f32.mrf.mxu1 }
 0x1d9   : > { %1664 = vpow2.f32 %v929_v38  ;;  %v1048_v45 = vadd.f32 %v2321_v44, %v2317_v34 }
 0x1da   : > { %1666 = vpow2.f32 %v931_v40 }
 0x1db   : > { %1049 = vadd.xlane.f32.xlu1 %v1048_v45  ;;  %809 = vmax.xlane.f32.xlu0 %v808_v13 }
 0x1dc   : > { %739 = vmatmul.bf16.gmra.mxu3 %v2224_v31  ;;  %v768_v59 = vpop.xlane.xlu1 %767 }
 0x1dd   : > { %v855_v47 = vsub.f32 %v2174_v62, %v768_v59  ;;  %v856_v55 = vsub.f32 %v2176_v0, %v768_v59 }
 0x1de   : > { %v2330_v30 = vpop.f32.mrf.mxu2 }
 0x1df   : > { %v2332_v58 = vpop.eup %1664  ;;  %v933_v35 = vmul.f32 1.442695, %v855_v47  ;;  %v935_v48 = vmul.f32 1.442695, %v856_v55  ;;  %v811_v50 = vmax.f32 %v2325_v57, %v2330_v30 }
 0x1e0   : > { %v2336_v36 = vpop.eup %1666  ;;  %v2342_v11 = vpop.f32.mrf.mxu1 }
 0x1e1   : > { %1668 = vpow2.f32 %v933_v35  ;;  %v1051_v31 = vadd.f32 %v2336_v36, %v2332_v58  ;;  %2826 = vst [vmem:[#allocation7_spill] sm:$0xff] %v2342_v11 }
 0x1e2   : > { %1670 = vpow2.f32 %v935_v48 }
 0x1e3   : > { %1052 = vadd.xlane.f32.xlu2 %v1051_v31  ;;  %812 = vmax.xlane.f32.xlu1 %v811_v50 }
 0x1e4   : > { %v771_v62 = vpop.xlane.xlu2 %770 }
 0x1e5   : > { %v857_v0 = vsub.f32 %v2180_v3, %v771_v62  ;;  %v858_v10 = vsub.f32 %v2182_v5, %v771_v62 }
 0x1e6   : > { %v2344_v15 = vpop.f32.mrf.mxu2 }
 0x1e7   : > { %2827 = vst [vmem:[#allocation8_spill] sm:$0xff] %v2344_v15  ;;  %v2346_v21 = vpop.eup %1668  ;;  %v937_v53 = vmul.f32 1.442695, %v857_v0  ;;  %v939_v54 = vmul.f32 1.442695, %v858_v10  ;;  %v814_v41 = vmax.f32 %v2342_v11, %v2344_v15 }
 0x1e8   : > { %v2350_v38 = vpop.eup %1670 }
 0x1e9   : > { %1672 = vpow2.f32 %v937_v53  ;;  %v1054_v40 = vadd.f32 %v2350_v38, %v2346_v21 }
 0x1ea   : > { %1674 = vpow2.f32 %v939_v54 }
 0x1eb   : > { %1055 = vadd.xlane.f32.xlu0 %v1054_v40  ;;  %815 = vmax.xlane.f32.xlu2 %v814_v41 }
 0x1ec   : > { %v774_v3 = vpop.xlane.xlu0 %773 }
 0x1ed   : > { %v859_v5 = vsub.f32 %v2186_v8, %v774_v3  ;;  %v860_v13 = vsub.f32 %v2188_v9, %v774_v3 }
 0x1ee   : > { %v2356_v45 = vpop.f32.mrf.mxu3 }
 0x1ef   : > { %v2358_v59 = vpop.eup %1672  ;;  %v941_v47 = vmul.f32 1.442695, %v859_v5  ;;  %v943_v55 = vmul.f32 1.442695, %v860_v13 }
 0x1f0   : > { %v2360_v35 = vpop.eup %1674 }
 0x1f1   : > { %1676 = vpow2.f32 %v941_v47  ;;  %v1057_v48 = vadd.f32 %v2360_v35, %v2358_v59 }
 0x1f2   : > { %1678 = vpow2.f32 %v943_v55 }
 0x1f3   : > { %1058 = vadd.xlane.f32.xlu1 %v1057_v48 }
 0x1f4   : > { %v777_v50 = vpop.xlane.xlu1 %776 }
 0x1f5   : > { %v861_v31 = vsub.f32 %v2192_v12, %v777_v50  ;;  %v862_v8 = vsub.f32 %v2197_v14, %v777_v50 }
 0x1f6   : > { %v2366_v9 = vpop.f32.mrf.mxu3 }
 0x1f7   : > { %v2368_v62 = vpop.eup %1676  ;;  %v945_v0 = vmul.f32 1.442695, %v861_v31  ;;  %v947_v10 = vmul.f32 1.442695, %v862_v8 }
 0x1f8   : > { %v2370_v53 = vpop.eup %1678 }
 0x1f9   : > { %1680 = vpow2.f32 %v945_v0  ;;  %v1060_v54 = vadd.f32 %v2370_v53, %v2368_v62 }
 0x1fa   : > { %1682 = vpow2.f32 %v947_v10 }
 0x1fb   : > { %1061 = vadd.xlane.f32.xlu2 %v1060_v54 }
 0x1fc   : > { %v2386_v13 = vpop.xlane.xlu2 %779 }
 0x1fe   : > { %v2374_v41 = vpop.f32.mrf.mxu3 }
 0x1ff   : > { %v2376_v12 = vpop.eup %1680 }
 0x200   : > { %2828 = vst [vmem:[#allocation9_spill] sm:$0xff] %v2376_v12  ;;  %v2378_v14 = vpop.eup %1682 }
 0x201   : > { %2829 = vst [vmem:[#allocation10_spill] sm:$0xff] %v2378_v14  ;;  %v1063_v40 = vadd.f32 %v2378_v14, %v2376_v12 }
 0x203   : > { %1064 = vadd.xlane.f32.xlu0 %v1063_v40 }
 0x204   : > { %v2390_v55 = vpop.xlane.xlu0 %782 }
 0x206   : > { %v2382_v3 = vpop.f32.mrf.mxu3 }
 0x20c   : > { %v2396_v31 = vpop.xlane.xlu1 %785 }
 0x20e   : > { %v2384_v5 = vpop.f32.mrf.mxu3 }
 0x214   : > { %v2392_v48 = vpop.xlane.xlu2 %788 }
 0x216   : > { %v2388_v47 = vpop.f32.mrf.mxu3 }
 0x21c   : > { %v2398_v8 = vpop.xlane.xlu0 %791 }
 0x21e   : > { %v2394_v50 = vpop.f32.mrf.mxu3 }
 0x224   : > { %v2405_v40 = vpop.xlane.xlu1 %794 }
 0x226   : > { %v1035_v0 = vpop.xlane.xlu2 %1034  ;;  %v2400_v10 = vpop.f32.mrf.mxu3 }
 0x227   : > { %1684 = vrcp.f32 %v1035_v0 }
 0x22d   : > { %v1685_v54 = vpop.eup %1684 }
 0x22e   : > { %v1161_v15 = vmul.f32 %v1685_v54, %v2245_v32  ;;  %v1162_v11 = vmul.f32 %v1685_v54, %v2249_v63  ;;  %v1038_v14 = vpop.xlane.xlu0 %1037  ;;  %v2409_v12 = vpop.f32.mrf.mxu3 }
 0x22f   : > { %1686 = vrcp.f32 %v1038_v14  ;;  %v817_v0 = vmax.f32 %v2356_v45, %v2409_v12  ;;  %v2419_v14 = vpop.xlane.xlu2 %797 }
 0x230   : > { %1225 = vst [vmem:[%s2411_s6] sm:$0xff] %v1161_v15 }
 0x231   : > { %1226 = vst [vmem:[%s2411_s6 + $0x8] sm:$0xff] %v1162_v11  ;;  %818 = vmax.xlane.f32.xlu0 %v817_v0 }
 0x235   : > { %v1687_v2 = vpop.eup %1686 }
 0x236   : > { %v1163_v32 = vmul.f32 %v1687_v2, %v2259_v7  ;;  %v1164_v63 = vmul.f32 %v1687_v2, %v2263_v17  ;;  %v1041_v54 = vpop.xlane.xlu1 %1040  ;;  %v2421_v61 = vpop.f32.mrf.mxu3 }
 0x237   : > { %1688 = vrcp.f32 %v1041_v54  ;;  %2830 = vst [vmem:[#allocation11_spill] sm:$0xff] %v2421_v61  ;;  %v820_v15 = vmax.f32 %v2366_v9, %v2421_v61  ;;  %v2429_v17 = vpop.xlane.xlu0 %800 }
 0x238   : > { %1227 = vst [vmem:[%s2411_s6 + $0x10] sm:$0xff] %v1163_v32 }
 0x239   : > { %1228 = vst [vmem:[%s2411_s6 + $0x18] sm:$0xff] %v1164_v63  ;;  %821 = vmax.xlane.f32.xlu1 %v820_v15 }
 0x23d   : > { %v1689_v11 = vpop.eup %1688 }
 0x23e   : > { %v1165_v0 = vmul.f32 %v1689_v11, %v2274_v28  ;;  %v1166_v7 = vmul.f32 %v1689_v11, %v2278_v42  ;;  %v1044_v2 = vpop.xlane.xlu2 %1043  ;;  %v2439_v42 = vpop.xlane.xlu1 %803 }
 0x23f   : > { %1690 = vrcp.f32 %v1044_v2  ;;  %v2431_v54 = vpop.f32.mrf.mxu3 }
 0x240   : > { %1229 = vst [vmem:[%s2411_s6 + $0x20] sm:$0xff] %v1165_v0  ;;  %v823_v32 = vmax.f32 %v2374_v41, %v2431_v54 }
 0x241   : > { %1230 = vst [vmem:[%s2411_s6 + $0x28] sm:$0xff] %v1166_v7 }
 0x242   : > { %824 = vmax.xlane.f32.xlu2 %v823_v32 }
 0x245   : > { %v1691_v63 = vpop.eup %1690 }
 0x246   : > { %v1167_v15 = vmul.f32 %v1691_v63, %v2288_v52  ;;  %v1168_v28 = vmul.f32 %v1691_v63, %v2292_v60  ;;  %v1047_v11 = vpop.xlane.xlu0 %1046  ;;  %v865_v52 = vsub.f32 %v2207_v20, %v2390_v55  ;;  %v866_v60 = vsub.f32 %v2212_v23, %v2390_v55  ;;  %v2453_v63 = vpop.xlane.xlu2 %806 }
 0x247   : > { %1692 = vrcp.f32 %v1047_v11  ;;  %v2441_v61 = vpop.f32.mrf.mxu3  ;;  %v867_v23 = vsub.f32 %v2216_v25, %v2396_v31  ;;  %v871_v55 = vsub.f32 %v2231_v37, %v2398_v8 }
 0x248   : > { %1231 = vst [vmem:[%s2411_s6 + $0x30] sm:$0xff] %v1167_v15  ;;  %v826_v0 = vmax.f32 %v2382_v3, %v2441_v61  ;;  %v955_v20 = vmul.f32 1.442695, %v866_v60 }
 0x249   : > { %1232 = vst [vmem:[%s2411_s6 + $0x38] sm:$0xff] %v1168_v28 }
 0x24a   : > { %827 = vmax.xlane.f32.xlu0 %v826_v0  ;;  %v953_v0 = vmul.f32 1.442695, %v865_v52 }
 0x24d   : > { %v1693_v7 = vpop.eup %1692 }
 0x24e   : > { %v1169_v2 = vmul.f32 %v1693_v7, %v2303_v4  ;;  %v1170_v32 = vmul.f32 %v1693_v7, %v2307_v22  ;;  %v1050_v15 = vpop.xlane.xlu1 %1049  ;;  %v868_v4 = vsub.f32 %v2218_v27, %v2396_v31  ;;  %v872_v7 = vsub.f32 %v2235_v43, %v2398_v8 }
 0x24f   : > { %1694 = vrcp.f32 %v1050_v15  ;;  %v2455_v11 = vpop.f32.mrf.mxu3  ;;  %v863_v15 = vsub.f32 %v2201_v16, %v2386_v13  ;;  %v864_v43 = vsub.f32 %v2203_v18, %v2386_v13  ;;  %v877_v13 = vsub.f32 %v2265_v19, %v2429_v17 }
 0x250   : > { %1233 = vst [vmem:[%s2411_s6 + $0x40] sm:$0xff] %v1169_v2  ;;  %v829_v28 = vmax.f32 %v2384_v5, %v2455_v11  ;;  %1696 = vpow2.f32 %v953_v0  ;;  %v2471_v2 = vpop.xlane.xlu0 %809  ;;  %v959_v31 = vmul.f32 1.442695, %v868_v4  ;;  %v878_v4 = vsub.f32 %v2272_v26, %v2429_v17 }
 0x251   : > { %1234 = vst [vmem:[%s2411_s6 + $0x48] sm:$0xff] %v1170_v32  ;;  %1698 = vpow2.f32 %v955_v20  ;;  %v957_v32 = vmul.f32 1.442695, %v867_v23  ;;  %v874_v20 = vsub.f32 %v2243_v56, %v2405_v40  ;;  %v949_v23 = vmul.f32 1.442695, %v863_v15 }
 0x252   : > { %830 = vmax.xlane.f32.xlu1 %v829_v28  ;;  %v873_v28 = vsub.f32 %v2239_v51, %v2405_v40  ;;  %v951_v18 = vmul.f32 1.442695, %v864_v43 }
 0x254   : > { %v969_v40 = vmul.f32 1.442695, %v873_v28 }
 0x255   : > { %v1695_v22 = vpop.eup %1694 }
 0x256   : > { %v1171_v52 = vmul.f32 %v1695_v22, %v2317_v34  ;;  %v1172_v60 = vmul.f32 %v1695_v22, %v2321_v44  ;;  %v1053_v25 = vpop.xlane.xlu2 %1052  ;;  %v965_v34 = vmul.f32 1.442695, %v871_v55  ;;  %v967_v44 = vmul.f32 1.442695, %v872_v7  ;;  %v2483_v8 = vpop.eup %1696 }
 0x257   : > { %1700 = vrcp.f32 %v1053_v25  ;;  %v2473_v27 = vpop.f32.mrf.mxu3  ;;  %v2487_v0 = vpop.eup %1698 }
 0x258   : > { %1235 = vst [vmem:[%s2411_s6 + $0x50] sm:$0xff] %v1171_v52  ;;  %v832_v37 = vmax.f32 %v2388_v47, %v2473_v27  ;;  %1702 = vpow2.f32 %v957_v32  ;;  %v2497_v55 = vpop.xlane.xlu1 %812  ;;  %v971_v52 = vmul.f32 1.442695, %v874_v20  ;;  %v1069_v19 = vadd.f32 %v2487_v0, %v2483_v8 }
 0x259   : > { %1236 = vst [vmem:[%s2411_s6 + $0x58] sm:$0xff] %v1172_v60  ;;  %1704 = vpow2.f32 %v959_v31  ;;  %v977_v60 = vmul.f32 1.442695, %v877_v13  ;;  %v979_v32 = vmul.f32 1.442695, %v878_v4 }
 0x25a   : > { %833 = vmax.xlane.f32.xlu2 %v832_v37  ;;  %1706 = vpow2.f32 %v965_v34  ;;  %v879_v37 = vsub.f32 %v2280_v46, %v2439_v42  ;;  %v883_v34 = vsub.f32 %v2311_v39, %v2471_v2 }
 0x25b   : > { %1708 = vpow2.f32 %v967_v44  ;;  %v884_v44 = vsub.f32 %v2315_v24, %v2471_v2 }
 0x25c   : > { %v989_v13 = vmul.f32 1.442695, %v883_v34 }
 0x25d   : > { %v1701_v16 = vpop.eup %1700 }
 0x25e   : > { %v1173_v51 = vmul.f32 %v1701_v16, %v2332_v58  ;;  %v1174_v22 = vmul.f32 %v1701_v16, %v2336_v36  ;;  %v1056_v56 = vpop.xlane.xlu0 %1055  ;;  %v2506_v17 = vpop.eup %1702  ;;  %v869_v58 = vsub.f32 %v2222_v29, %v2392_v48  ;;  %v870_v36 = vsub.f32 %v2227_v33, %v2392_v48 }
 0x25f   : > { %1710 = vrcp.f32 %v1056_v56  ;;  %v2499_v7 = vpop.f32.mrf.mxu3  ;;  %v2513_v25 = vpop.eup %1704  ;;  %v880_v29 = vsub.f32 %v2286_v49, %v2439_v42  ;;  %v981_v16 = vmul.f32 1.442695, %v879_v37  ;;  %v876_v37 = vsub.f32 %v2257_v6, %v2419_v14 }
 0x260   : > { %1237 = vst [vmem:[%s2411_s6 + $0x60] sm:$0xff] %v1173_v51  ;;  %v835_v26 = vmax.f32 %v2394_v50, %v2499_v7  ;;  %1712 = vpow2.f32 %v949_v23  ;;  %v2515_v31 = vpop.eup %1706  ;;  %v961_v48 = vmul.f32 1.442695, %v869_v58  ;;  %v963_v43 = vmul.f32 1.442695, %v870_v36  ;;  %v2529_v20 = vpop.xlane.xlu2 %815 }
 0x261   : > { %1238 = vst [vmem:[%s2411_s6 + $0x68] sm:$0xff] %v1174_v22  ;;  %1714 = vpow2.f32 %v951_v18  ;;  %v2519_v15 = vpop.eup %1708  ;;  %v983_v39 = vmul.f32 1.442695, %v880_v29  ;;  %v991_v51 = vmul.f32 1.442695, %v884_v44 }
 0x262   : > { %1070 = vadd.xlane.f32.xlu2 %v1069_v19  ;;  %836 = vmax.xlane.f32.xlu0 %v835_v26  ;;  %1716 = vpow2.f32 %v969_v40  ;;  %v875_v40 = vsub.f32 %v2251_v1, %v2419_v14  ;;  %v885_v19 = vsub.f32 %v2325_v57, %v2497_v55  ;;  %v886_v26 = vsub.f32 %v2330_v30, %v2497_v55 }
 0x263   : > { %1718 = vpow2.f32 %v971_v52 }
 0x264   : > { %1720 = vpow2.f32 %v977_v60  ;;  %v973_v29 = vmul.f32 1.442695, %v875_v40 }
 0x265   : > { %v1711_v33 = vpop.eup %1710  ;;  %1722 = vpow2.f32 %v979_v32 }
 0x266   : > { %v1175_v46 = vmul.f32 %v1711_v33, %v2346_v21  ;;  %v1176_v28 = vmul.f32 %v1711_v33, %v2350_v38  ;;  %v1059_v49 = vpop.xlane.xlu1 %1058  ;;  %v2531_v42 = vpop.eup %1712  ;;  %v1078_v21 = vadd.f32 %v2519_v15, %v2515_v31  ;;  %v1072_v38 = vadd.f32 %v2513_v25, %v2506_v17 }
 0x267   : > { %1724 = vrcp.f32 %v1059_v49  ;;  %v2533_v23 = vpop.f32.mrf.mxu3  ;;  %v2535_v18 = vpop.eup %1714  ;;  %v2831_v49 = vld [vmem:[#allocation5_spill] sm:$0xff] }
 0x268   : > { %1239 = vst [vmem:[%s2411_s6 + $0x70] sm:$0xff] %v1175_v46  ;;  %v838_v24 = vmax.f32 %v2400_v10, %v2533_v23  ;;  %v2544_v2 = vpop.eup %1716  ;;  %1726 = vpow2.f32 %v961_v48  ;;  %v1066_v55 = vadd.f32 %v2535_v18, %v2531_v42  ;;  %v995_v48 = vmul.f32 1.442695, %v886_v26  ;;  %v2833_v26 = vld [vmem:[#allocation9_spill] sm:$0xff] }
 0x269   : > { %1240 = vst [vmem:[%s2411_s6 + $0x78] sm:$0xff] %v1176_v28  ;;  %v2547_v4 = vpop.eup %1718  ;;  %1728 = vpow2.f32 %v963_v43  ;;  %v975_v43 = vmul.f32 1.442695, %v876_v37  ;;  %v2835_v37 = vld [vmem:[#allocation7_spill] sm:$0xff] }
 0x26a   : > { %1079 = vadd.xlane.f32.xlu2 %v1078_v21  ;;  %1073 = vadd.xlane.f32.xlu0 %v1072_v38  ;;  %v2549_v22 = vpop.eup %1720  ;;  %1730 = vpow2.f32 %v981_v16  ;;  %v1081_v30 = vadd.f32 %v2547_v4, %v2544_v2  ;;  %v881_v16 = vsub.f32 %v2831_v49, %v2453_v63 }
 0x26b   : > { %839 = vmax.xlane.f32.xlu1 %v838_v24  ;;  %v2551_v56 = vpop.eup %1722  ;;  %1732 = vpow2.f32 %v983_v39  ;;  %v2832_v39 = vld [vmem:[#allocation6_spill] sm:$0xff] }
 0x26c   : > { %1734 = vpow2.f32 %v989_v13  ;;  %v1087_v57 = vadd.f32 %v2551_v56, %v2549_v22  ;;  %v882_v24 = vsub.f32 %v2832_v39, %v2453_v63  ;;  %v985_v63 = vmul.f32 1.442695, %v881_v16 }
 0x26d   : > { %v1725_v52 = vpop.eup %1724  ;;  %1736 = vpow2.f32 %v991_v51 }
 0x26e   : > { %v1177_v58 = vmul.f32 %v1725_v52, %v2358_v59  ;;  %v1178_v36 = vmul.f32 %v1725_v52, %v2360_v35  ;;  %v1062_v60 = vpop.xlane.xlu2 %1061  ;;  %v2561_v32 = vpop.eup %1726  ;;  %v993_v35 = vmul.f32 1.442695, %v885_v19  ;;  %v987_v40 = vmul.f32 1.442695, %v882_v24 }
 0x26f   : > { %1738 = vrcp.f32 %v1062_v60  ;;  %v2563_v1 = vpop.eup %1728 }
 0x270   : > { %1241 = vst [vmem:[%s2411_s6 + $0x80] sm:$0xff] %v1177_v58  ;;  %v2572_v59 = vpop.eup %1730  ;;  %1740 = vpow2.f32 %v973_v29  ;;  %v887_v29 = vsub.f32 %v2835_v37, %v2529_v20 }
 0x271   : > { %1242 = vst [vmem:[%s2411_s6 + $0x88] sm:$0xff] %v1178_v36  ;;  %v2577_v33 = vpop.eup %1732  ;;  %1742 = vpow2.f32 %v993_v35  ;;  %v2834_v36 = vld [vmem:[#allocation10_spill] sm:$0xff] }
 0x272   : > { %1088 = vadd.xlane.f32.xlu2 %v1087_v57  ;;  %1082 = vadd.xlane.f32.xlu0 %v1081_v30  ;;  %v2579_v6 = vpop.eup %1734  ;;  %1744 = vpow2.f32 %v995_v48  ;;  %v1090_v38 = vadd.f32 %v2577_v33, %v2572_v59  ;;  %v2836_v57 = vld [vmem:[#allocation8_spill] sm:$0xff]  ;;  %v997_v48 = vmul.f32 1.442695, %v887_v29 }
 0x273   : > { %1067 = vadd.xlane.f32.xlu1 %v1066_v55  ;;  %v2581_v14 = vpop.eup %1736  ;;  %v888_v30 = vsub.f32 %v2836_v57, %v2529_v20 }
 0x274   : > { %v1096_v21 = vadd.f32 %v2581_v14, %v2579_v6 }
 0x275   : > { %v1739_v34 = vpop.eup %1738 }
 0x276   : > { %v1179_v44 = vmul.f32 %v1739_v34, %v2368_v62  ;;  %v1180_v46 = vmul.f32 %v1739_v34, %v2370_v53  ;;  %v1065_v28 = vpop.xlane.xlu0 %1064  ;;  %v1075_v62 = vadd.f32 %v2563_v1, %v2561_v32  ;;  %v2597_v53 = vpop.eup %1740 }
 0x277   : > { %1746 = vrcp.f32 %v1065_v28  ;;  %v2599_v13 = vpop.eup %1742 }
 0x278   : > { %1748 = vpow2.f32 %v975_v43  ;;  %1243 = vst [vmem:[%s2411_s6 + $0x90] sm:$0xff] %v1179_v44  ;;  %v2601_v51 = vpop.eup %1744  ;;  %v999_v43 = vmul.f32 1.442695, %v888_v30 }
 0x279   : > { %1244 = vst [vmem:[%s2411_s6 + $0x98] sm:$0xff] %v1180_v46  ;;  %1750 = vpow2.f32 %v985_v63  ;;  %v1099_v35 = vadd.f32 %v2601_v51, %v2599_v13 }
 0x27a   : > { %1097 = vadd.xlane.f32.xlu2 %v1096_v21  ;;  %1091 = vadd.xlane.f32.xlu0 %v1090_v38  ;;  %1752 = vpow2.f32 %v987_v40  ;;  %v2837_v40 = vld [vmem:[#allocation11_spill] sm:$0xff] }
 0x27b   : > { %1076 = vadd.xlane.f32.xlu1 %v1075_v62  ;;  %1754 = vpow2.f32 %v997_v48 }
 0x27c   : > { %1756 = vpow2.f32 %v999_v43 }
 0x27d   : > { %v1747_v52 = vpop.eup %1746 }
 0x27e   : > { %v2603_v19 = vpop.eup %1748  ;;  %v1181_v58 = vmul.f32 %v1747_v52, %v2833_v26  ;;  %v1182_v60 = vmul.f32 %v1747_v52, %v2834_v36 }
 0x27f   : > { %v1084_v55 = vadd.f32 %v2603_v19, %v2597_v53  ;;  %v2617_v34 = vpop.eup %1750 }
 0x280   : > { %1245 = vst [vmem:[%s2411_s6 + $0xa0] sm:$0xff] %v1181_v58  ;;  %v2619_v44 = vpop.eup %1752 }
 0x281   : > { %1246 = vst [vmem:[%s2411_s6 + $0xa8] sm:$0xff] %v1182_v60  ;;  %v1093_v20 = vadd.f32 %v2619_v44, %v2617_v34  ;;  %v2623_v46 = vpop.eup %1754 }
 0x282   : > { %1100 = vadd.xlane.f32.xlu0 %v1099_v35  ;;  %v2625_v28 = vpop.eup %1756 }
 0x283   : > { %1085 = vadd.xlane.f32.xlu1 %v1084_v55  ;;  %v1102_v49 = vadd.f32 %v2625_v28, %v2623_v46 }
 0x28b   : > { %1094 = vadd.xlane.f32.xlu1 %v1093_v20 }
 0x293   : > { %1103 = vadd.xlane.f32.xlu1 %v1102_v49 }
 0x2a4   : > { %v819_v16 = vpop.xlane.xlu0 %818 }
 0x2a5   : > { %v889_v39 = vsub.f32 %v2356_v45, %v819_v16  ;;  %v890_v24 = vsub.f32 %v2409_v12, %v819_v16 }
 0x2a7   : > { %v1001_v21 = vmul.f32 1.442695, %v889_v39  ;;  %v1003_v38 = vmul.f32 1.442695, %v890_v24 }
 0x2a9   : > { %1758 = vpow2.f32 %v1001_v21 }
 0x2aa   : > { %1760 = vpow2.f32 %v1003_v38 }
 0x2ac   : > { %v822_v62 = vpop.xlane.xlu1 %821 }
 0x2ad   : > { %v891_v63 = vsub.f32 %v2366_v9, %v822_v62  ;;  %v892_v52 = vsub.f32 %v2837_v40, %v822_v62 }
 0x2af   : > { %v2633_v26 = vpop.eup %1758  ;;  %v1005_v58 = vmul.f32 1.442695, %v891_v63  ;;  %v1007_v36 = vmul.f32 1.442695, %v892_v52 }
 0x2b0   : > { %v2635_v60 = vpop.eup %1760 }
 0x2b1   : > { %1762 = vpow2.f32 %v1005_v58  ;;  %v1105_v45 = vadd.f32 %v2635_v60, %v2633_v26 }
 0x2b2   : > { %1764 = vpow2.f32 %v1007_v36 }
 0x2b3   : > { %1106 = vadd.xlane.f32.xlu2 %v1105_v45 }
 0x2b5   : > { %v825_v12 = vpop.xlane.xlu2 %824 }
 0x2b6   : > { %v893_v37 = vsub.f32 %v2374_v41, %v825_v12  ;;  %v894_v29 = vsub.f32 %v2431_v54, %v825_v12 }
 0x2b7   : > { %v2641_v9 = vpop.eup %1762 }
 0x2b8   : > { %v1009_v57 = vmul.f32 1.442695, %v893_v37  ;;  %v1011_v30 = vmul.f32 1.442695, %v894_v29  ;;  %v2643_v35 = vpop.eup %1764 }
 0x2b9   : > { %v1108_v55 = vadd.f32 %v2643_v35, %v2641_v9 }
 0x2ba   : > { %1766 = vpow2.f32 %v1009_v57 }
 0x2bb   : > { %1768 = vpow2.f32 %v1011_v30  ;;  %1109 = vadd.xlane.f32.xlu0 %v1108_v55 }
 0x2bd   : > { %v828_v48 = vpop.xlane.xlu0 %827 }
 0x2be   : > { %v895_v43 = vsub.f32 %v2382_v3, %v828_v48  ;;  %v896_v20 = vsub.f32 %v2441_v61, %v828_v48 }
 0x2c0   : > { %v2649_v41 = vpop.eup %1766  ;;  %v1013_v54 = vmul.f32 1.442695, %v895_v43  ;;  %v1015_v49 = vmul.f32 1.442695, %v896_v20 }
 0x2c1   : > { %v2651_v16 = vpop.eup %1768 }
 0x2c2   : > { %1770 = vpow2.f32 %v1013_v54  ;;  %v1111_v39 = vadd.f32 %v2651_v16, %v2649_v41 }
 0x2c3   : > { %1772 = vpow2.f32 %v1015_v49 }
 0x2c4   : > { %1112 = vadd.xlane.f32.xlu1 %v1111_v39 }
 0x2c5   : > { %v831_v24 = vpop.xlane.xlu1 %830 }
 0x2c6   : > { %v897_v21 = vsub.f32 %v2384_v5, %v831_v24  ;;  %v898_v38 = vsub.f32 %v2455_v11, %v831_v24 }
 0x2c8   : > { %v2657_v3 = vpop.eup %1770  ;;  %v1017_v61 = vmul.f32 1.442695, %v897_v21  ;;  %v1019_v62 = vmul.f32 1.442695, %v898_v38 }
 0x2c9   : > { %v2659_v63 = vpop.eup %1772 }
 0x2ca   : > { %1774 = vpow2.f32 %v1017_v61  ;;  %v1114_v40 = vadd.f32 %v2659_v63, %v2657_v3 }
 0x2cb   : > { %1776 = vpow2.f32 %v1019_v62 }
 0x2cc   : > { %1115 = vadd.xlane.f32.xlu2 %v1114_v40 }
 0x2cd   : > { %v834_v52 = vpop.xlane.xlu2 %833 }
 0x2ce   : > { %v899_v58 = vsub.f32 %v2388_v47, %v834_v52  ;;  %v900_v36 = vsub.f32 %v2473_v27, %v834_v52 }
 0x2d0   : > { %v2665_v5 = vpop.eup %1774  ;;  %v1021_v11 = vmul.f32 1.442695, %v899_v58  ;;  %v1023_v45 = vmul.f32 1.442695, %v900_v36 }
 0x2d1   : > { %v2667_v12 = vpop.eup %1776 }
 0x2d2   : > { %1778 = vpow2.f32 %v1021_v11  ;;  %v1117_v37 = vadd.f32 %v2667_v12, %v2665_v5 }
 0x2d3   : > { %1780 = vpow2.f32 %v1023_v45 }
 0x2d4   : > { %1118 = vadd.xlane.f32.xlu0 %v1117_v37 }
 0x2d5   : > { %v1071_v29 = vpop.xlane.xlu2 %1070  ;;  %v837_v57 = vpop.xlane.xlu0 %836 }
 0x2d6   : > { %1782 = vrcp.f32 %v1071_v29  ;;  %v901_v30 = vsub.f32 %v2394_v50, %v837_v57  ;;  %v902_v47 = vsub.f32 %v2499_v7, %v837_v57 }
 0x2d8   : > { %v2673_v27 = vpop.eup %1778  ;;  %v1025_v55 = vmul.f32 1.442695, %v901_v30  ;;  %v1027_v48 = vmul.f32 1.442695, %v902_v47 }
 0x2d9   : > { %v2675_v43 = vpop.eup %1780 }
 0x2da   : > { %1784 = vpow2.f32 %v1025_v55  ;;  %v1120_v20 = vadd.f32 %v2675_v43, %v2673_v27 }
 0x2db   : > { %1786 = vpow2.f32 %v1027_v48 }
 0x2dc   : > { %v1783_v54 = vpop.eup %1782  ;;  %1121 = vadd.xlane.f32.xlu1 %v1120_v20 }
 0x2dd   : > { %v1185_v49 = vmul.f32 %v1783_v54, %v2483_v8  ;;  %v1186_v50 = vmul.f32 %v1783_v54, %v2487_v0  ;;  %v1080_v7 = vpop.xlane.xlu2 %1079  ;;  %v1074_v39 = vpop.xlane.xlu0 %1073 }
 0x2de   : > { %1788 = vrcp.f32 %v1080_v7  ;;  %v840_v24 = vpop.xlane.xlu1 %839 }
 0x2df   : > { %1249 = vst [vmem:[%s2411_s6 + $0xc0] sm:$0xff] %v1185_v49  ;;  %1790 = vrcp.f32 %v1074_v39  ;;  %v903_v21 = vsub.f32 %v2400_v10, %v840_v24  ;;  %v904_v38 = vsub.f32 %v2533_v23, %v840_v24 }
 0x2e0   : > { %v2684_v61 = vpop.eup %1784  ;;  %1250 = vst [vmem:[%s2411_s6 + $0xc8] sm:$0xff] %v1186_v50 }
 0x2e1   : > { %v2687_v62 = vpop.eup %1786  ;;  %v1029_v40 = vmul.f32 1.442695, %v903_v21  ;;  %v1031_v8 = vmul.f32 1.442695, %v904_v38 }
 0x2e2   : > { %v1123_v0 = vadd.f32 %v2687_v62, %v2684_v61 }
 0x2e3   : > { %1792 = vpow2.f32 %v1029_v40 }
 0x2e4   : > { %v1789_v52 = vpop.eup %1788  ;;  %1794 = vpow2.f32 %v1031_v8  ;;  %1124 = vadd.xlane.f32.xlu2 %v1123_v0 }
 0x2e5   : > { %v1791_v10 = vpop.eup %1790  ;;  %v1191_v23 = vmul.f32 %v1789_v52, %v2515_v31  ;;  %v1192_v58 = vmul.f32 %v1789_v52, %v2519_v15  ;;  %v1089_v36 = vpop.xlane.xlu2 %1088 }
 0x2e6   : > { %v1083_v11 = vpop.xlane.xlu0 %1082  ;;  %v1187_v45 = vmul.f32 %v1791_v10, %v2506_v17  ;;  %v1188_v37 = vmul.f32 %v1791_v10, %v2513_v25  ;;  %1796 = vrcp.f32 %v1089_v36  ;;  %v1068_v29 = vpop.xlane.xlu1 %1067 }
 0x2e7   : > { %1255 = vst [vmem:[%s2411_s6 + $0xf0] sm:$0xff] %v1191_v23  ;;  %1798 = vrcp.f32 %v1083_v11 }
 0x2e8   : > { %1256 = vst [vmem:[%s2411_s6 + $0xf8] sm:$0xff] %v1192_v58  ;;  %1800 = vrcp.f32 %v1068_v29 }
 0x2e9   : > { %v2697_v57 = vpop.eup %1792  ;;  %1251 = vst [vmem:[%s2411_s6 + $0xd0] sm:$0xff] %v1187_v45 }
 0x2ea   : > { %v2700_v30 = vpop.eup %1794  ;;  %1252 = vst [vmem:[%s2411_s6 + $0xd8] sm:$0xff] %v1188_v37 }
 0x2eb   : > { %v1126_v31 = vadd.f32 %v2700_v30, %v2697_v57 }
 0x2ec   : > { %v1797_v17 = vpop.eup %1796 }
 0x2ed   : > { %v1799_v15 = vpop.eup %1798  ;;  %v1197_v25 = vmul.f32 %v1797_v17, %v2549_v22  ;;  %v1198_v47 = vmul.f32 %v1797_v17, %v2551_v56  ;;  %1127 = vadd.xlane.f32.xlu0 %v1126_v31  ;;  %v1098_v55 = vpop.xlane.xlu2 %1097 }
 0x2ee   : > { %v1092_v48 = vpop.xlane.xlu0 %1091  ;;  %v1801_v20 = vpop.eup %1800  ;;  %v1193_v54 = vmul.f32 %v1799_v15, %v2544_v2  ;;  %v1194_v49 = vmul.f32 %v1799_v15, %v2547_v4  ;;  %1802 = vrcp.f32 %v1098_v55 }
 0x2ef   : > { %v1077_v50 = vpop.xlane.xlu1 %1076  ;;  %1261 = vst [vmem:[%s2411_s6 + $0x120] sm:$0xff] %v1197_v25  ;;  %v1183_v7 = vmul.f32 %v1801_v20, %v2531_v42  ;;  %1804 = vrcp.f32 %v1092_v48  ;;  %v1184_v22 = vmul.f32 %v1801_v20, %v2535_v18 }
 0x2f0   : > { %1262 = vst [vmem:[%s2411_s6 + $0x128] sm:$0xff] %v1198_v47  ;;  %1806 = vrcp.f32 %v1077_v50 }
 0x2f1   : > { %1257 = vst [vmem:[%s2411_s6 + $0x100] sm:$0xff] %v1193_v54 }
 0x2f2   : > { %1258 = vst [vmem:[%s2411_s6 + $0x108] sm:$0xff] %v1194_v49 }
 0x2f3   : > { %1247 = vst [vmem:[%s2411_s6 + $0xb0] sm:$0xff] %v1183_v7 }
 0x2f4   : > { %v1803_v56 = vpop.eup %1802  ;;  %1248 = vst [vmem:[%s2411_s6 + $0xb8] sm:$0xff] %v1184_v22 }
 0x2f5   : > { %v1805_v2 = vpop.eup %1804  ;;  %v1203_v4 = vmul.f32 %v1803_v56, %v2579_v6  ;;  %v1204_v42 = vmul.f32 %v1803_v56, %v2581_v14 }
 0x2f6   : > { %v1101_v39 = vpop.xlane.xlu0 %1100  ;;  %v1807_v24 = vpop.eup %1806  ;;  %v1199_v18 = vmul.f32 %v1805_v2, %v2572_v59  ;;  %v1200_v21 = vmul.f32 %v1805_v2, %v2577_v33 }
 0x2f7   : > { %1808 = vrcp.f32 %v1101_v39  ;;  %v1086_v38 = vpop.xlane.xlu1 %1085  ;;  %1267 = vst [vmem:[%s2411_s6 + $0x150] sm:$0xff] %v1203_v4  ;;  %v1189_v40 = vmul.f32 %v1807_v24, %v2561_v32  ;;  %v1190_v6 = vmul.f32 %v1807_v24, %v2563_v1 }
 0x2f8   : > { %1810 = vrcp.f32 %v1086_v38  ;;  %1268 = vst [vmem:[%s2411_s6 + $0x158] sm:$0xff] %v1204_v42 }
 0x2f9   : > { %1263 = vst [vmem:[%s2411_s6 + $0x130] sm:$0xff] %v1199_v18 }
 0x2fa   : > { %1264 = vst [vmem:[%s2411_s6 + $0x138] sm:$0xff] %v1200_v21 }
 0x2fb   : > { %1253 = vst [vmem:[%s2411_s6 + $0xe0] sm:$0xff] %v1189_v40 }
 0x2fc   : > { %1254 = vst [vmem:[%s2411_s6 + $0xe8] sm:$0xff] %v1190_v6 }
 0x2fd   : > { %v1809_v14 = vpop.eup %1808 }
 0x2fe   : > { %v1811_v59 = vpop.eup %1810  ;;  %v1205_v33 = vmul.f32 %v1809_v14, %v2599_v13  ;;  %v1206_v8 = vmul.f32 %v1809_v14, %v2601_v51 }
 0x2ff   : > { %v1195_v32 = vmul.f32 %v1811_v59, %v2597_v53  ;;  %v1196_v0 = vmul.f32 %v1811_v59, %v2603_v19  ;;  %v1095_v52 = vpop.xlane.xlu1 %1094 }
 0x300   : > { %1269 = vst [vmem:[%s2411_s6 + $0x160] sm:$0xff] %v1205_v33  ;;  %1812 = vrcp.f32 %v1095_v52 }
 0x301   : > { %1270 = vst [vmem:[%s2411_s6 + $0x168] sm:$0xff] %v1206_v8 }
 0x302   : > { %1259 = vst [vmem:[%s2411_s6 + $0x110] sm:$0xff] %v1195_v32 }
 0x303   : > { %1260 = vst [vmem:[%s2411_s6 + $0x118] sm:$0xff] %v1196_v0 }
 0x306   : > { %v1813_v1 = vpop.eup %1812 }
 0x307   : > { %v1201_v10 = vmul.f32 %v1813_v1, %v2617_v34  ;;  %v1202_v13 = vmul.f32 %v1813_v1, %v2619_v44  ;;  %v1104_v23 = vpop.xlane.xlu1 %1103 }
 0x308   : > { %1814 = vrcp.f32 %v1104_v23 }
 0x309   : > { %1265 = vst [vmem:[%s2411_s6 + $0x140] sm:$0xff] %v1201_v10 }
 0x30a   : > { %1266 = vst [vmem:[%s2411_s6 + $0x148] sm:$0xff] %v1202_v13 }
 0x30e   : > { %v1815_v53 = vpop.eup %1814 }
 0x30f   : > { %v1207_v51 = vmul.f32 %v1815_v53, %v2623_v46  ;;  %v1208_v19 = vmul.f32 %v1815_v53, %v2625_v28 }
 0x311   : > { %1271 = vst [vmem:[%s2411_s6 + $0x170] sm:$0xff] %v1207_v51 }
 0x312   : > { %1272 = vst [vmem:[%s2411_s6 + $0x178] sm:$0xff] %v1208_v19 }
 0x326   : > { %v1107_v58 = vpop.xlane.xlu2 %1106 }
 0x327   : > { %1816 = vrcp.f32 %v1107_v58 }
 0x32d   : > { %v1817_v34 = vpop.eup %1816 }
 0x32e   : > { %v1209_v44 = vmul.f32 %v1817_v34, %v2633_v26  ;;  %v1210_v36 = vmul.f32 %v1817_v34, %v2635_v60  ;;  %v1110_v11 = vpop.xlane.xlu0 %1109 }
 0x32f   : > { %1818 = vrcp.f32 %v1110_v11 }
 0x330   : > { %1273 = vst [vmem:[%s2411_s6 + $0x180] sm:$0xff] %v1209_v44 }
 0x331   : > { %1274 = vst [vmem:[%s2411_s6 + $0x188] sm:$0xff] %v1210_v36 }
 0x335   : > { %v1819_v46 = vpop.eup %1818 }
 0x336   : > { %v1211_v28 = vmul.f32 %v1819_v46, %v2641_v9  ;;  %v1212_v45 = vmul.f32 %v1819_v46, %v2643_v35 }
 0x337   : > { %v1113_v37 = vpop.xlane.xlu1 %1112 }
 0x338   : > { %1820 = vrcp.f32 %v1113_v37  ;;  %1275 = vst [vmem:[%s2411_s6 + $0x190] sm:$0xff] %v1211_v28 }
 0x339   : > { %1276 = vst [vmem:[%s2411_s6 + $0x198] sm:$0xff] %v1212_v45 }
 0x33e   : > { %v1821_v26 = vpop.eup %1820 }
 0x33f   : > { %v1213_v60 = vmul.f32 %v1821_v26, %v2649_v41  ;;  %v1214_v29 = vmul.f32 %v1821_v26, %v2651_v16  ;;  %v1116_v31 = vpop.xlane.xlu2 %1115 }
 0x340   : > { %1822 = vrcp.f32 %v1116_v31 }
 0x341   : > { %1277 = vst [vmem:[%s2411_s6 + $0x1a0] sm:$0xff] %v1213_v60 }
 0x342   : > { %1278 = vst [vmem:[%s2411_s6 + $0x1a8] sm:$0xff] %v1214_v29 }
 0x346   : > { %v1823_v9 = vpop.eup %1822 }
 0x347   : > { %v1215_v35 = vmul.f32 %v1823_v9, %v2657_v3  ;;  %v1216_v17 = vmul.f32 %v1823_v9, %v2659_v63  ;;  %v1119_v15 = vpop.xlane.xlu0 %1118 }
 0x348   : > { %1824 = vrcp.f32 %v1119_v15 }
 0x349   : > { %1279 = vst [vmem:[%s2411_s6 + $0x1b0] sm:$0xff] %v1215_v35 }
 0x34a   : > { %1280 = vst [vmem:[%s2411_s6 + $0x1b8] sm:$0xff] %v1216_v17 }
 0x34e   : > { %v1825_v41 = vpop.eup %1824 }
 0x34f   : > { %v1217_v16 = vmul.f32 %v1825_v41, %v2665_v5  ;;  %v1218_v25 = vmul.f32 %v1825_v41, %v2667_v12  ;;  %v1122_v47 = vpop.xlane.xlu1 %1121 }
 0x350   : > { %1826 = vrcp.f32 %v1122_v47 }
 0x351   : > { %1281 = vst [vmem:[%s2411_s6 + $0x1c0] sm:$0xff] %v1217_v16 }
 0x352   : > { %1282 = vst [vmem:[%s2411_s6 + $0x1c8] sm:$0xff] %v1218_v25 }
 0x356   : > { %v1827_v3 = vpop.eup %1826 }
 0x357   : > { %v1219_v63 = vmul.f32 %v1827_v3, %v2673_v27  ;;  %v1220_v55 = vmul.f32 %v1827_v3, %v2675_v43  ;;  %v1125_v48 = vpop.xlane.xlu2 %1124 }
 0x358   : > { %1828 = vrcp.f32 %v1125_v48 }
 0x359   : > { %1283 = vst [vmem:[%s2411_s6 + $0x1d0] sm:$0xff] %v1219_v63 }
 0x35a   : > { %1284 = vst [vmem:[%s2411_s6 + $0x1d8] sm:$0xff] %v1220_v55 }
 0x35e   : > { %v1829_v5 = vpop.eup %1828 }
 0x35f   : > { %v1221_v12 = vmul.f32 %v1829_v5, %v2684_v61  ;;  %v1222_v20 = vmul.f32 %v1829_v5, %v2687_v62 }
 0x360   : > { %v1128_v54 = vpop.xlane.xlu0 %1127 }
 0x361   : > { %1285 = vst [vmem:[%s2411_s6 + $0x1e0] sm:$0xff] %v1221_v12  ;;  %1830 = vrcp.f32 %v1128_v54 }
 0x362   : > { %1286 = vst [vmem:[%s2411_s6 + $0x1e8] sm:$0xff] %v1222_v20 }
 0x367   : > { %v1831_v27 = vpop.eup %1830 }
 0x368   : > { %v1223_v43 = vmul.f32 %v1831_v27, %v2697_v57  ;;  %v1224_v61 = vmul.f32 %v1831_v27, %v2700_v30 }
 0x36a   : > { %1287 = vst [vmem:[%s2411_s6 + $0x1f0] sm:$0xff] %v1223_v43 }
 0x36b   : > { %1288 = vst [vmem:[%s2411_s6 + $0x1f8] sm:$0xff] %v1224_v61 }
 0x36c   : > { %1859 = shalt.err (!%p1856_p3)
}
 0x36d   : > { %s1896_s30 = smov 256   ;;  %s1897_s4 = smov 16  }
 0x36e   : > { %1599 = dma.vmem_to_hbm [thread:$0]  (%p1956_p5), %s1304_s17, 8192, %s1306_s19, %s1290_s16, %s1896_s30, %s1896_s30, %s1897_s4  }
 0x36f PF: > { %p1605_p4 = scmp.ge.s32.totalorder %s1894_s15, 2  ;;  %s1320_s9 = sand.u32 1, %s1882_s12  }
 0x370   : > { %s1321_s5 = scalar_lea.sflag [#allocation3], %s1320_s9 }
 0x371   : > { %p1602_p7 = pnand %p1605_p4, %p1960_p6 }
 0x373   : > { %p1603_p8 = pneg %p1602_p7 }
 0x375   : > { %1877 = dma.done.wait (%p1603_p8), %s1321_s5, 8192  }
 0x376   : > { %1879 = vsyncadd (%p1603_p8), %s1321_s5, 4294959104  ;;  %p13_p9 = scmp.ge.s32.totalorder %s1943_s18, 4   ;;  %s2838_s12 = smov %s1886_s13 }
 0x377   : > { %s2839_s13 = smov %s1890_s14  ;;  %s2840_s14 = smov %s1954_s21 }
 0x378   : > { %s2841_s15 = smov %s1943_s18  ;;  %15 = sbr.rel (!%p13_p9) target bundleno = 3 (0x3), region = 67 }
 0x37d   :  { %1327 = vsyncpa [#allocation3], 1 }
 0x37e   :  { %1329 = vsyncpa [#allocation3 + $0x1], 1 }

// kernel: tpu_custom_call.1
= control target key start
LH: loop header
LB: loop body
LE: loop exit
PB: predicated region body
PF: predicated region fallthrough
CT: control target
= control target key end

     0   :  { %8 = vsyncpa [#allocation3], 0  ;;  %s2811_s0 = inlined_call_operand.vmem [shape: bf16[512,64], index: 0, kind: input, shape index: {}]   ;;  %s2812_s1 = inlined_call_operand.vmem [shape: bf16[64,128], index: 1, kind: input, shape index: {}]   ;;  %s2813_s2 = inlined_call_operand.vmem [shape: bf16[128,256], index: 2, kind: input, shape index: {}]   ;;  %s2814_s3 = inlined_call_operand.hbm [shape: f32[512,256], index: 3, kind: output, shape index: {}]  }
   0x1   :  { %10 = vsyncpa [#allocation3 + $0x1], 0  ;;  %s1918_s12 = smov 0   ;;  %s1920_s13 = smov 0  }
   0x2   :  { %s1922_s14 = smov 0   ;;  %s1924_s15 = smov 0  }
   0x3 LB: > { %s1939_s16 = sadd.s32 4294967295, %s1894_s15   ;;  %s1368_s17 = sadd.s32 4294967294, %s1894_s15   ;;  %s1894_s15 = sphi %s1924_s15, %s2841_s15   ;;  %s1890_s14 = sphi %s1922_s14, %s2840_s14   ;;  %s1886_s13 = sphi %s1920_s13, %s2839_s13   ;;  %s1882_s12 = sphi %s1918_s12, %s2838_s12  }
   0x4   : > { %s1943_s18 = sadd.s32 1, %s1894_s15   ;;  %s91_s19 = sadd.s32 1, %s1890_s14 }
   0x5   : > { %s88_s20 = ssub.s32 %s1894_s15, %s1943_s18  ;;  %p101_p0 = scmp.ne.s32.totalorder %s1890_s14, %s1886_s13 }
   0x6   : > { %p89_p1 = scmp.eq.s32.totalorder %s88_s20, 0  ;;  %p102_p2 = scmp.eq.s32.totalorder %s1939_s16, 1 }
   0x7   : > { %p107_p3 = scmp.ne.s32.totalorder %s1886_s13, %s1882_s12  ;;  %p108_p4 = scmp.eq.s32.totalorder %s1368_s17, 1 }
   0x8   : > { %s1954_s21 = scalar_select %p89_p1, %s1890_s14, %s91_s19  }
   0x9   : > { %p1956_p5 = por %p102_p2, %p101_p0  ;;  %p1960_p6 = por %p108_p4, %p107_p3 }
   0xa   : > { %p1371_p7 = scmp.ge.s32.totalorder %s1894_s15, 1  ;;  %p141_p8 = scmp.lt.s32.totalorder %s1894_s15, 3 }
   0xc   : > { %p142_p9 = pnand %p1371_p7, %p141_p8 }
   0xe   : > { %145 = sbr.rel (%p142_p9) target bundleno = 879 (0x36f), region = 32 }
  0x13   : > { %v1560_v0 = vld [vmem:[%s2812_s1 + $0x18] sm:$0xff]  ;;  %s1373_s26 = sshll.u32 %s1939_s16, 5  ;;  %v1559_v1 = vld [vmem:[%s2812_s1 + $0x10] sm:$0xff]  ;;  %v1558_v2 = vld [vmem:[%s2812_s1 + $0x8] sm:$0xff]  ;;  %vm317_vm0 = vcmask 523264   ;;  %s1578_s7 = sshll.u32 %s1939_s16, 9 }
  0x14   : > { %p166_p10 = scmp.lt.s32.totalorder %s1373_s26, 63  ;;  %370 = vmatpush.bf16.msra.mxu0 %v1560_v0  ;;  %1579 = vmatpush.bf16.msra.mxu3 %v1560_v0  ;;  %v1557_v3 = vld [vmem:[%s2812_s1] sm:$0xff]  ;;  %v1529_v9 = vld [vmem:[%s2813_s2 + $0x70] sm:$0xf]  ;;  %v1576_v10 = vld [vmem:[%s2813_s2 + $0x74] sm:$0xf0]  ;;  %s1302_s11 = scalar_lea.hbm %s2814_s3, %s1578_s7 }
  0x15   : > { %v1575_v11 = vld [vmem:[%s2813_s2 + $0x74] sm:$0xf]  ;;  %v1530_v12 = vor.u32 %v1576_v10, %v1529_v9  ;;  %v1531_v13 = vld [vmem:[%s2813_s2 + $0x78] sm:$0xf0]  ;;  %v1521_v14 = vld [vmem:[%s2813_s2 + $0x60] sm:$0xf] }
  0x16   : > { %s2843_s26 = smov (!%p166_p10, %s1373_s26), 63  ;;  %v1574_v15 = vld [vmem:[%s2813_s2 + $0x64] sm:$0xf0]  ;;  %v2012_v16 = vor.u32 %v1575_v11, %v1531_v13  ;;  %v1573_v17 = vld [vmem:[%s2813_s2 + $0x64] sm:$0xf]  ;;  %s1305_s19 = sshll.u32 %s1302_s11, 4  ;;  %s1306_s19 = int_to_ptr.hbm [resolvable:$true] %s1305_s19 }
  0x17   : > { %s1374_s4 = sshll.u32 %s2843_s26, 2  ;;  %v1523_v18 = vld [vmem:[%s2813_s2 + $0x68] sm:$0xf0]  ;;  %567 = vmatpush.bf16.msra.mxu1 %v1530_v12  ;;  %v1522_v19 = vor.u32 %v1574_v15, %v1521_v14  ;;  %v1513_v22 = vld [vmem:[%s2813_s2 + $0x50] sm:$0xf]  ;;  %s1846_s20 = sshra.s32 %s1306_s19, 4  ;;  %s1847_s20 = int_to_ptr.hbm [resolvable:$true] %s1846_s20 }
  0x18   : > { %371 = vmatpush.bf16.msra.mxu0 %v1559_v1  ;;  %1580 = vmatpush.bf16.msra.mxu3 %v1559_v1  ;;  %s1982_s9 = scalar_lea.vmem %s2811_s0, %s1374_s4  ;;  %v2021_v20 = vor.u32 %v1573_v17, %v1523_v18  ;;  %v1572_v23 = vld [vmem:[%s2813_s2 + $0x54] sm:$0xf0]  ;;  %v1571_v24 = vld [vmem:[%s2813_s2 + $0x54] sm:$0xf]  ;;  %v1515_v26 = vld [vmem:[%s2813_s2 + $0x58] sm:$0xf0]  ;;  %p1853_p0 = scmp.lt.s32.totalorder %s1847_s20, %s2814_s3 }
  0x19   : > { %v1541_v4 = vld [vmem:[%s1982_s9] sm:$0xff]  ;;  %v1542_v5 = vld [vmem:[%s1982_s9 + $0x8] sm:$0xff]  ;;  %v1543_v6 = vld [vmem:[%s1982_s9 + $0x10] sm:$0xff]  ;;  %656 = vmatpush.bf16.msra.mxu2 %v2012_v16  ;;  %v1514_v25 = vor.u32 %v1572_v23, %v1513_v22  ;;  %v2038_v27 = vor.u32 %v1571_v24, %v1515_v26  ;;  %s1848_s24 = scalar_lea.hbm %s1847_s20, 512  ;;  %s1852_s27 = scalar_lea.hbm %s2814_s3, 1024 }
  0x1a   : > { %v1544_v7 = vld [vmem:[%s1982_s9 + $0x18] sm:$0xff]  ;;  %v1545_v8 = vld [vmem:[%s1982_s9 + $0x20] sm:$0xff]  ;;  %v1546_v21 = vld [vmem:[%s1982_s9 + $0x28] sm:$0xff]  ;;  %p1849_p11 = scmp.ne.s32.totalorder %s1847_s20, %s1848_s24  ;;  %p1854_p1 = scmp.lt.s32.totalorder %s1852_s27, %s1848_s24 }
  0x1b   : > { %568 = vmatpush.bf16.msra.mxu1 %v1522_v19  ;;  %v1505_v28 = vld [vmem:[%s2813_s2 + $0x40] sm:$0xf]  ;;  %v1570_v29 = vld [vmem:[%s2813_s2 + $0x44] sm:$0xf0]  ;;  %v1569_v30 = vld [vmem:[%s2813_s2 + $0x44] sm:$0xf] }
  0x1c   : > { %372 = vmatpush.bf16.msra.mxu0 %v1558_v2  ;;  %1581 = vmatpush.bf16.msra.mxu3 %v1558_v2  ;;  %v1506_v31 = vor.u32 %v1570_v29, %v1505_v28  ;;  %v1507_v32 = vld [vmem:[%s2813_s2 + $0x48] sm:$0xf0]  ;;  %v1497_v34 = vld [vmem:[%s2813_s2 + $0x30] sm:$0xf]  ;;  %v1568_v35 = vld [vmem:[%s2813_s2 + $0x34] sm:$0xf0]  ;;  %p1850_p12 = pnand %p1849_p11, %p1956_p5  ;;  %p1855_p2 = por %p1854_p1, %p1853_p0 }
  0x1d   : > { %657 = vmatpush.bf16.msra.mxu2 %v2021_v20  ;;  %v2053_v33 = vor.u32 %v1569_v30, %v1507_v32  ;;  %v1567_v36 = vld [vmem:[%s2813_s2 + $0x34] sm:$0xf]  ;;  %v1499_v37 = vld [vmem:[%s2813_s2 + $0x38] sm:$0xf0]  ;;  %v1498_v38 = vor.u32 %v1568_v35, %v1497_v34  ;;  %v1489_v40 = vld [vmem:[%s2813_s2 + $0x20] sm:$0xf] }
  0x1e   : > { %v2068_v39 = vor.u32 %v1567_v36, %v1499_v37  ;;  %v1566_v41 = vld [vmem:[%s2813_s2 + $0x24] sm:$0xf0]  ;;  %v1565_v42 = vld [vmem:[%s2813_s2 + $0x24] sm:$0xf]  ;;  %v1491_v44 = vld [vmem:[%s2813_s2 + $0x28] sm:$0xf0]  ;;  %p1851_p13 = pneg %p1850_p12 }
  0x1f   : > { %569 = vmatpush.bf16.msra.mxu1 %v1514_v25  ;;  %v1490_v43 = vor.u32 %v1566_v41, %v1489_v40  ;;  %v1547_v45 = vld [vmem:[%s1982_s9 + $0x30] sm:$0xff]  ;;  %v1494_v46 = vor.u32 %v1565_v42, %v1491_v44  ;;  %v1564_v48 = vld [vmem:[%s2813_s2 + $0x14] sm:$0xf0]  ;;  %v1483_v51 = vld [vmem:[%s2813_s2 + $0x18] sm:$0xf0] }
  0x20   : > { %373 = vmatpush.bf16.msra.mxu0 %v1557_v3  ;;  %1582 = vmatpush.bf16.msra.mxu3 %v1557_v3  ;;  %v1481_v47 = vld [vmem:[%s2813_s2 + $0x10] sm:$0xf]  ;;  %v1563_v49 = vld [vmem:[%s2813_s2 + $0x14] sm:$0xf]  ;;  %v1473_v53 = vld [vmem:[%s2813_s2] sm:$0xf]  ;;  %p1856_p3 = pnand %p1855_p2, %p1851_p13 }
  0x21   : > { %658 = vmatpush.bf16.msra.mxu2 %v2038_v27  ;;  %v1482_v50 = vor.u32 %v1564_v48, %v1481_v47  ;;  %v1486_v52 = vor.u32 %v1563_v49, %v1483_v51  ;;  %v1562_v54 = vld [vmem:[%s2813_s2 + $0x4] sm:$0xf0]  ;;  %v1561_v55 = vld [vmem:[%s2813_s2 + $0x4] sm:$0xf]  ;;  %v1475_v57 = vld [vmem:[%s2813_s2 + $0x8] sm:$0xf0] }
  0x22   : > { %v1474_v56 = vor.u32 %v1562_v54, %v1473_v53  ;;  %v1478_v58 = vor.u32 %v1561_v55, %v1475_v57  ;;  %v1548_v59 = vld [vmem:[%s1982_s9 + $0x38] sm:$0xff]  ;;  %v1549_v60 = vld [vmem:[%s1982_s9 + $0x40] sm:$0xff]  ;;  %v1550_v0 = vld [vmem:[%s1982_s9 + $0x48] sm:$0xff] }
  0x23   : > { %1455 = vmatmul.msk.bf16.vlgmr.msra.gmra.mxu0 %vm317_vm0, %v1541_v4  ;;  %570 = vmatpush.bf16.msra.mxu1 %v1506_v31  ;;  %v1551_v4 = vld [vmem:[%s1982_s9 + $0x50] sm:$0xff]  ;;  %v1552_v9 = vld [vmem:[%s1982_s9 + $0x58] sm:$0xff]  ;;  %v1553_v14 = vld [vmem:[%s1982_s9 + $0x60] sm:$0xff] }
  0x24   : > { %1583 = vmatpush.bf16.msrb.mxu3 %v1530_v12  ;;  %v1555_v11 = vld [vmem:[%s1982_s9 + $0x70] sm:$0xff] }
  0x25   : > { %659 = vmatpush.bf16.msra.mxu2 %v2053_v33 }
  0x27   : > { %571 = vmatpush.bf16.msra.mxu1 %v1498_v38 }
  0x28   : > { %1584 = vmatpush.bf16.msrb.mxu3 %v1522_v19 }
  0x29   : > { %660 = vmatpush.bf16.msra.mxu2 %v2068_v39 }
  0x2b   : > { %572 = vmatpush.bf16.msra.mxu1 %v1490_v43 }
  0x2c   : > { %1585 = vmatpush.bf16.msrb.mxu3 %v1514_v25 }
  0x2d   : > { %661 = vmatpush.bf16.msra.mxu2 %v1494_v46 }
  0x2f   : > { %573 = vmatpush.bf16.msra.mxu1 %v1482_v50 }
  0x30   : > { %1586 = vmatpush.bf16.msrb.mxu3 %v1506_v31 }
  0x31   : > { %662 = vmatpush.bf16.msra.mxu2 %v1486_v52 }
  0x33   : > { %1456 = vmatmul.msk.bf16.gmra.mxu0 %vm317_vm0, %v1542_v5  ;;  %574 = vmatpush.bf16.msra.mxu1 %v1474_v56 }
  0x34   : > { %1587 = vmatpush.bf16.msrb.mxu3 %v1498_v38 }
  0x35   : > { %663 = vmatpush.bf16.msra.mxu2 %v1478_v58 }
  0x38   : > { %1588 = vmatpush.bf16.msrb.mxu3 %v1490_v43 }
  0x3c   : > { %1589 = vmatpush.bf16.msrb.mxu3 %v1482_v50 }
  0x40   : > { %1590 = vmatpush.bf16.msrb.mxu3 %v1474_v56 }
  0x43   : > { %1457 = vmatmul.msk.bf16.gmra.mxu0 %vm317_vm0, %v1543_v6  ;;  %v1554_v6 = vld [vmem:[%s1982_s9 + $0x68] sm:$0xff] }
  0x44   : > { %1468 = vmatmul.msk.bf16.vlgmr.msra.gmra.mxu3 %vm317_vm0, %v1554_v6 }
  0x45   : > { %1591 = vmatpush.bf16.msra.mxu3 %v2012_v16  ;;  %v1556_v16 = vld [vmem:[%s1982_s9 + $0x78] sm:$0xff]  ;;  %s162_s9 = sand.u32 1, %s1886_s13  }
  0x46   : > { %s1372_s5 = sshll.u32 %s162_s9, 9  ;;  %s1290_s16 = scalar_lea.sflag [#allocation3], %s162_s9 }
  0x47   : > { %s2411_s6 = scalar_lea.vmem [#allocation2], %s1372_s5 }
  0x48   : > { %s1303_s17 = sshll.u32 %s2411_s6, 4  ;;  %s1304_s17 = int_to_ptr.vmem [resolvable:$true] %s1303_s17 }
  0x49   : > { %1592 = vmatpush.bf16.msra.mxu3 %v2021_v20 }
  0x4d   : > { %1593 = vmatpush.bf16.msra.mxu3 %v2038_v27 }
  0x51   : > { %1594 = vmatpush.bf16.msra.mxu3 %v2053_v33 }
  0x53   : > { %1458 = vmatmul.msk.bf16.gmra.mxu0 %vm317_vm0, %v1544_v7 }
  0x54   : > { %1469 = vmatmul.msk.bf16.gmra.mxu3 %vm317_vm0, %v1555_v11 }
  0x55   : > { %1595 = vmatpush.bf16.msra.mxu3 %v2068_v39 }
  0x59   : > { %1596 = vmatpush.bf16.msra.mxu3 %v1494_v46 }
  0x5d   : > { %1597 = vmatpush.bf16.msra.mxu3 %v1486_v52 }
  0x61   : > { %1598 = vmatpush.bf16.msra.mxu3 %v1478_v58 }
  0x63   : > { %1459 = vmatmul.msk.bf16.gmra.mxu0 %vm317_vm0, %v1545_v8 }
  0x64   : > { %1470 = vmatmul.msk.bf16.gmra.mxu3 %vm317_vm0, %v1556_v16 }
  0x73   : > { %1460 = vmatmul.msk.bf16.gmra.mxu0 %vm317_vm0, %v1546_v21 }
  0x83   : > { %1461 = vmatmul.msk.bf16.gmra.mxu0 %vm317_vm0, %v1547_v45 }
  0x93   : > { %1462 = vmatmul.msk.bf16.gmra.mxu0 %vm317_vm0, %v1548_v59 }
  0xa0   : > { %v375_v61 = vpop.f32.mrf.mxu0 }
  0xa3   : > { %1463 = vmatmul.msk.bf16.gmra.mxu0 %vm317_vm0, %v1549_v60 }
  0xa8   : > { %v377_v62 = vpop.f32.mrf.mxu0 }
  0xa9   : > { %v455_v63 = vpack.c.bf16 %v377_v62, %v375_v61 }
  0xab   : > { %575 = vmatmul.bf16.vlgmr.msra.gmra.mxu1 %v455_v63  ;;  %664 = vmatmul.bf16.vlgmr.msra.gmra.mxu2 %v455_v63 }
  0xb0   : > { %v380_v1 = vpop.f32.mrf.mxu0 }
  0xb3   : > { %1464 = vmatmul.msk.bf16.gmra.mxu0 %vm317_vm0, %v1550_v0 }
  0xb8   : > { %v382_v2 = vpop.f32.mrf.mxu0 }
  0xb9   : > { %v456_v3 = vpack.c.bf16 %v382_v2, %v380_v1 }
  0xbb   : > { %580 = vmatmul.bf16.gmra.mxu1 %v456_v3  ;;  %669 = vmatmul.bf16.gmra.mxu2 %v456_v3 }
  0xc0   : > { %v385_v5 = vpop.f32.mrf.mxu0 }
  0xc3   : > { %1465 = vmatmul.msk.bf16.gmra.mxu0 %vm317_vm0, %v1551_v4 }
  0xc7   : > { %v440_v63 = vpop.f32.mrf.mxu3 }
  0xc8   : > { %v387_v7 = vpop.f32.mrf.mxu0 }
  0xc9   : > { %v457_v8 = vpack.c.bf16 %v387_v7, %v385_v5 }
  0xcb   : > { %585 = vmatmul.bf16.gmra.mxu1 %v457_v8  ;;  %674 = vmatmul.bf16.gmra.mxu2 %v457_v8 }
  0xcf   : > { %v442_v6 = vpop.f32.mrf.mxu3 }
  0xd0   : > { %v390_v10 = vpop.f32.mrf.mxu0 }
  0xd3   : > { %1466 = vmatmul.msk.bf16.gmra.mxu0 %vm317_vm0, %v1552_v9 }
  0xd7   : > { %v445_v11 = vpop.f32.mrf.mxu3 }
  0xd8   : > { %v392_v12 = vpop.f32.mrf.mxu0 }
  0xd9   : > { %v458_v13 = vpack.c.bf16 %v392_v12, %v390_v10 }
  0xdb   : > { %590 = vmatmul.bf16.gmra.mxu1 %v458_v13  ;;  %679 = vmatmul.bf16.gmra.mxu2 %v458_v13  ;;  %v2194_v13 = vpack.c.bf16 %v442_v6, %v440_v63 }
  0xe0   : > { %v395_v15 = vpop.f32.mrf.mxu0 }
  0xe3   : > { %1467 = vmatmul.msk.bf16.gmra.mxu0 %vm317_vm0, %v1553_v14 }
  0xe8   : > { %v397_v17 = vpop.f32.mrf.mxu0 }
  0xe9   : > { %v459_v18 = vpack.c.bf16 %v397_v17, %v395_v15  ;;  %v447_v17 = vpop.f32.mrf.mxu3 }
  0xeb   : > { %595 = vmatmul.bf16.gmra.mxu1 %v459_v18  ;;  %684 = vmatmul.bf16.gmra.mxu2 %v459_v18 }
  0xf0   : > { %v400_v19 = vpop.f32.mrf.mxu0 }
  0xf8   : > { %v402_v20 = vpop.f32.mrf.mxu0 }
  0xf9   : > { %v460_v21 = vpack.c.bf16 %v402_v20, %v400_v19 }
  0xfb   : > { %600 = vmatmul.bf16.gmra.mxu1 %v460_v21  ;;  %689 = vmatmul.bf16.gmra.mxu2 %v460_v21  ;;  %v2209_v21 = vpack.c.bf16 %v447_v17, %v445_v11 }
 0x100   : > { %v405_v22 = vpop.f32.mrf.mxu0 }
 0x108   : > { %v407_v23 = vpop.f32.mrf.mxu0 }
 0x109   : > { %v461_v24 = vpack.c.bf16 %v407_v23, %v405_v22  ;;  %v450_v22 = vpop.f32.mrf.mxu3 }
 0x10b   : > { %605 = vmatmul.bf16.gmra.mxu1 %v461_v24  ;;  %694 = vmatmul.bf16.gmra.mxu2 %v461_v24 }
 0x110   : > { %v410_v25 = vpop.f32.mrf.mxu0 }
 0x118   : > { %v412_v26 = vpop.f32.mrf.mxu0 }
 0x119   : > { %v462_v27 = vpack.c.bf16 %v412_v26, %v410_v25  ;;  %v452_v26 = vpop.f32.mrf.mxu3 }
 0x11b   : > { %610 = vmatmul.bf16.gmra.mxu1 %v462_v27  ;;  %699 = vmatmul.bf16.gmra.mxu2 %v462_v27 }
 0x120   : > { %v415_v28 = vpop.f32.mrf.mxu0 }
 0x128   : > { %v417_v29 = vpop.f32.mrf.mxu0  ;;  %v2132_v30 = vpop.f32.mrf.mxu1 }
 0x129   : > { %v463_v31 = vpack.c.bf16 %v417_v29, %v415_v28 }
 0x12b   : > { %615 = vmatmul.bf16.gmra.mxu1 %v463_v31  ;;  %704 = vmatmul.bf16.gmra.mxu2 %v463_v31  ;;  %v2224_v31 = vpack.c.bf16 %v452_v26, %v450_v22 }
 0x12e   : > { %v2134_v32 = vpop.f32.mrf.mxu2 }
 0x12f   : > { %v745_v33 = vmax.f32 %v2132_v30, %v2134_v32 }
 0x130   : > { %v420_v34 = vpop.f32.mrf.mxu0  ;;  %v2138_v35 = vpop.f32.mrf.mxu1 }
 0x131   : > { %746 = vmax.xlane.f32.xlu0 %v745_v33 }
 0x136   : > { %v2140_v36 = vpop.f32.mrf.mxu2 }
 0x137   : > { %v748_v37 = vmax.f32 %v2138_v35, %v2140_v36 }
 0x138   : > { %v422_v38 = vpop.f32.mrf.mxu0  ;;  %v2144_v39 = vpop.f32.mrf.mxu1 }
 0x139   : > { %v464_v40 = vpack.c.bf16 %v422_v38, %v420_v34  ;;  %749 = vmax.xlane.f32.xlu0 %v748_v37 }
 0x13b   : > { %620 = vmatmul.bf16.gmra.mxu1 %v464_v40  ;;  %709 = vmatmul.bf16.gmra.mxu2 %v464_v40 }
 0x13e   : > { %v2146_v41 = vpop.f32.mrf.mxu2 }
 0x13f   : > { %v751_v42 = vmax.f32 %v2144_v39, %v2146_v41 }
 0x140   : > { %v425_v43 = vpop.f32.mrf.mxu0  ;;  %v2150_v44 = vpop.f32.mrf.mxu1 }
 0x141   : > { %752 = vmax.xlane.f32.xlu1 %v751_v42 }
 0x146   : > { %v2152_v45 = vpop.f32.mrf.mxu2 }
 0x147   : > { %v754_v46 = vmax.f32 %v2150_v44, %v2152_v45 }
 0x148   : > { %v427_v47 = vpop.f32.mrf.mxu0  ;;  %v2156_v48 = vpop.f32.mrf.mxu1 }
 0x149   : > { %v465_v49 = vpack.c.bf16 %v427_v47, %v425_v43  ;;  %755 = vmax.xlane.f32.xlu1 %v754_v46 }
 0x14b   : > { %625 = vmatmul.bf16.gmra.mxu1 %v465_v49  ;;  %714 = vmatmul.bf16.gmra.mxu2 %v465_v49 }
 0x14e   : > { %v2158_v50 = vpop.f32.mrf.mxu2 }
 0x14f   : > { %v757_v51 = vmax.f32 %v2156_v48, %v2158_v50 }
 0x150   : > { %v430_v52 = vpop.f32.mrf.mxu0  ;;  %v2162_v53 = vpop.f32.mrf.mxu1 }
 0x151   : > { %758 = vmax.xlane.f32.xlu2 %v757_v51 }
 0x156   : > { %v2164_v54 = vpop.f32.mrf.mxu2 }
 0x157   : > { %v760_v55 = vmax.f32 %v2162_v53, %v2164_v54 }
 0x158   : > { %v432_v56 = vpop.f32.mrf.mxu0  ;;  %v2168_v57 = vpop.f32.mrf.mxu1 }
 0x159   : > { %v466_v58 = vpack.c.bf16 %v432_v56, %v430_v52  ;;  %761 = vmax.xlane.f32.xlu2 %v760_v55 }
 0x15b   : > { %630 = vmatmul.bf16.gmra.mxu1 %v466_v58  ;;  %719 = vmatmul.bf16.gmra.mxu2 %v466_v58 }
 0x15e   : > { %v2170_v59 = vpop.f32.mrf.mxu2 }
 0x15f   : > { %v763_v60 = vmax.f32 %v2168_v57, %v2170_v59 }
 0x160   : > { %v435_v61 = vpop.f32.mrf.mxu0  ;;  %v2174_v62 = vpop.f32.mrf.mxu1 }
 0x161   : > { %764 = vmax.xlane.f32.xlu0 %v763_v60 }
 0x166   : > { %v2176_v0 = vpop.f32.mrf.mxu2 }
 0x167   : > { %v766_v1 = vmax.f32 %v2174_v62, %v2176_v0 }
 0x168   : > { %v437_v2 = vpop.f32.mrf.mxu0  ;;  %v2180_v3 = vpop.f32.mrf.mxu1 }
 0x169   : > { %v467_v4 = vpack.c.bf16 %v437_v2, %v435_v61  ;;  %767 = vmax.xlane.f32.xlu1 %v766_v1 }
 0x16b   : > { %635 = vmatmul.bf16.vlgmr.msrb.gmra.mxu3 %v467_v4 }
 0x16e   : > { %v2182_v5 = vpop.f32.mrf.mxu2 }
 0x16f   : > { %v769_v7 = vmax.f32 %v2180_v3, %v2182_v5 }
 0x170   : > { %v2186_v8 = vpop.f32.mrf.mxu1 }
 0x171   : > { %770 = vmax.xlane.f32.xlu2 %v769_v7 }
 0x176   : > { %v2188_v9 = vpop.f32.mrf.mxu2 }
 0x177   : > { %v772_v10 = vmax.f32 %v2186_v8, %v2188_v9 }
 0x178   : > { %v2192_v12 = vpop.f32.mrf.mxu1 }
 0x179   : > { %773 = vmax.xlane.f32.xlu0 %v772_v10 }
 0x17b   : > { %640 = vmatmul.bf16.gmra.mxu3 %v2194_v13 }
 0x17e   : > { %v2197_v14 = vpop.f32.mrf.mxu2 }
 0x17f   : > { %v775_v15 = vmax.f32 %v2192_v12, %v2197_v14 }
 0x180   : > { %v2201_v16 = vpop.f32.mrf.mxu1 }
 0x181   : > { %776 = vmax.xlane.f32.xlu1 %v775_v15 }
 0x186   : > { %v2203_v18 = vpop.f32.mrf.mxu2 }
 0x187   : > { %v778_v19 = vmax.f32 %v2201_v16, %v2203_v18 }
 0x188   : > { %v2207_v20 = vpop.f32.mrf.mxu1 }
 0x189   : > { %779 = vmax.xlane.f32.xlu2 %v778_v19 }
 0x18b   : > { %645 = vmatmul.bf16.gmra.mxu3 %v2209_v21 }
 0x18e   : > { %v2212_v23 = vpop.f32.mrf.mxu2 }
 0x18f   : > { %v781_v24 = vmax.f32 %v2207_v20, %v2212_v23 }
 0x190   : > { %v2216_v25 = vpop.f32.mrf.mxu1 }
 0x191   : > { %782 = vmax.xlane.f32.xlu0 %v781_v24 }
 0x196   : > { %v2218_v27 = vpop.f32.mrf.mxu2 }
 0x197   : > { %v784_v28 = vmax.f32 %v2216_v25, %v2218_v27 }
 0x198   : > { %v2222_v29 = vpop.f32.mrf.mxu1 }
 0x199   : > { %785 = vmax.xlane.f32.xlu1 %v784_v28 }
 0x19b   : > { %650 = vmatmul.bf16.gmra.mxu3 %v2224_v31 }
 0x19e   : > { %v2227_v33 = vpop.f32.mrf.mxu2 }
 0x19f   : > { %v787_v34 = vmax.f32 %v2222_v29, %v2227_v33 }
 0x1a0   : > { %v2231_v37 = vpop.f32.mrf.mxu1 }
 0x1a1   : > { %788 = vmax.xlane.f32.xlu2 %v787_v34 }
 0x1a4   : > { %v747_v38 = vpop.xlane.xlu0 %746 }
 0x1a5   : > { %v841_v40 = vsub.f32 %v2132_v30, %v747_v38  ;;  %v842_v42 = vsub.f32 %v2134_v32, %v747_v38 }
 0x1a6   : > { %v2235_v43 = vpop.f32.mrf.mxu2 }
 0x1a7   : > { %v905_v46 = vmul.f32 1.442695, %v841_v40  ;;  %v907_v47 = vmul.f32 1.442695, %v842_v42  ;;  %v790_v49 = vmax.f32 %v2231_v37, %v2235_v43 }
 0x1a8   : > { %v2239_v51 = vpop.f32.mrf.mxu1 }
 0x1a9   : > { %1640 = vpow2.f32 %v905_v46  ;;  %791 = vmax.xlane.f32.xlu0 %v790_v49 }
 0x1aa   : > { %1642 = vpow2.f32 %v907_v47 }
 0x1ab   : > { %724 = vmatmul.bf16.vlgmr.msra.gmra.mxu3 %v467_v4 }
 0x1ac   : > { %v750_v52 = vpop.xlane.xlu0 %749 }
 0x1ad   : > { %v843_v55 = vsub.f32 %v2138_v35, %v750_v52  ;;  %v844_v30 = vsub.f32 %v2140_v36, %v750_v52 }
 0x1ae   : > { %v2243_v56 = vpop.f32.mrf.mxu2 }
 0x1af   : > { %v2245_v32 = vpop.eup %1640  ;;  %v909_v58 = vmul.f32 1.442695, %v843_v55  ;;  %v911_v60 = vmul.f32 1.442695, %v844_v30  ;;  %v793_v61 = vmax.f32 %v2239_v51, %v2243_v56 }
 0x1b0   : > { %v2249_v63 = vpop.eup %1642  ;;  %v2251_v1 = vpop.f32.mrf.mxu1 }
 0x1b1   : > { %1644 = vpow2.f32 %v909_v58  ;;  %794 = vmax.xlane.f32.xlu1 %v793_v61  ;;  %v1033_v35 = vadd.f32 %v2249_v63, %v2245_v32 }
 0x1b2   : > { %1646 = vpow2.f32 %v911_v60 }
 0x1b3   : > { %1034 = vadd.xlane.f32.xlu2 %v1033_v35 }
 0x1b4   : > { %v753_v36 = vpop.xlane.xlu1 %752 }
 0x1b5   : > { %v845_v2 = vsub.f32 %v2144_v39, %v753_v36  ;;  %v846_v4 = vsub.f32 %v2146_v41, %v753_v36 }
 0x1b6   : > { %v2257_v6 = vpop.f32.mrf.mxu2 }
 0x1b7   : > { %v2259_v7 = vpop.eup %1644  ;;  %v913_v10 = vmul.f32 1.442695, %v845_v2  ;;  %v915_v11 = vmul.f32 1.442695, %v846_v4  ;;  %v796_v15 = vmax.f32 %v2251_v1, %v2257_v6 }
 0x1b8   : > { %v2263_v17 = vpop.eup %1646  ;;  %v2265_v19 = vpop.f32.mrf.mxu1 }
 0x1b9   : > { %1648 = vpow2.f32 %v913_v10  ;;  %v1036_v22 = vadd.f32 %v2263_v17, %v2259_v7 }
 0x1ba   : > { %1650 = vpow2.f32 %v915_v11 }
 0x1bb   : > { %1037 = vadd.xlane.f32.xlu0 %v1036_v22  ;;  %797 = vmax.xlane.f32.xlu2 %v796_v15 }
 0x1bc   : > { %729 = vmatmul.bf16.gmra.mxu3 %v2194_v13  ;;  %v756_v39 = vpop.xlane.xlu1 %755 }
 0x1bd   : > { %v847_v41 = vsub.f32 %v2150_v44, %v756_v39  ;;  %v848_v24 = vsub.f32 %v2152_v45, %v756_v39 }
 0x1be   : > { %v2272_v26 = vpop.f32.mrf.mxu2 }
 0x1bf   : > { %v2274_v28 = vpop.eup %1648  ;;  %v917_v34 = vmul.f32 1.442695, %v847_v41  ;;  %v919_v38 = vmul.f32 1.442695, %v848_v24  ;;  %v799_v40 = vmax.f32 %v2265_v19, %v2272_v26 }
 0x1c0   : > { %v2278_v42 = vpop.eup %1650  ;;  %v2280_v46 = vpop.f32.mrf.mxu1 }
 0x1c1   : > { %1652 = vpow2.f32 %v917_v34  ;;  %v1039_v13 = vadd.f32 %v2278_v42, %v2274_v28 }
 0x1c2   : > { %1654 = vpow2.f32 %v919_v38 }
 0x1c3   : > { %1040 = vadd.xlane.f32.xlu1 %v1039_v13  ;;  %800 = vmax.xlane.f32.xlu0 %v799_v40 }
 0x1c4   : > { %v759_v44 = vpop.xlane.xlu2 %758 }
 0x1c5   : > { %v849_v45 = vsub.f32 %v2156_v48, %v759_v44  ;;  %v850_v47 = vsub.f32 %v2158_v50, %v759_v44 }
 0x1c6   : > { %v2286_v49 = vpop.f32.mrf.mxu2 }
 0x1c7   : > { %v2288_v52 = vpop.eup %1652  ;;  %v921_v55 = vmul.f32 1.442695, %v849_v45  ;;  %v923_v30 = vmul.f32 1.442695, %v850_v47  ;;  %v802_v58 = vmax.f32 %v2280_v46, %v2286_v49 }
 0x1c8   : > { %v2292_v60 = vpop.eup %1654  ;;  %v2294_v61 = vpop.f32.mrf.mxu1 }
 0x1c9   : > { %2824 = vst [vmem:[#allocation5_spill] sm:$0xff] %v2294_v61  ;;  %1656 = vpow2.f32 %v921_v55  ;;  %v1042_v35 = vadd.f32 %v2292_v60, %v2288_v52 }
 0x1ca   : > { %1658 = vpow2.f32 %v923_v30 }
 0x1cb   : > { %1043 = vadd.xlane.f32.xlu2 %v1042_v35  ;;  %803 = vmax.xlane.f32.xlu1 %v802_v58 }
 0x1cc   : > { %734 = vmatmul.bf16.gmra.mxu3 %v2209_v21  ;;  %v762_v48 = vpop.xlane.xlu2 %761 }
 0x1cd   : > { %v851_v50 = vsub.f32 %v2162_v53, %v762_v48  ;;  %v852_v36 = vsub.f32 %v2164_v54, %v762_v48 }
 0x1ce   : > { %v2301_v2 = vpop.f32.mrf.mxu2 }
 0x1cf   : > { %2825 = vst [vmem:[#allocation6_spill] sm:$0xff] %v2301_v2  ;;  %v2303_v4 = vpop.eup %1656  ;;  %v925_v10 = vmul.f32 1.442695, %v851_v50  ;;  %v927_v11 = vmul.f32 1.442695, %v852_v36  ;;  %v805_v15 = vmax.f32 %v2294_v61, %v2301_v2 }
 0x1d0   : > { %v2307_v22 = vpop.eup %1658  ;;  %v2311_v39 = vpop.f32.mrf.mxu1 }
 0x1d1   : > { %1660 = vpow2.f32 %v925_v10  ;;  %v1045_v21 = vadd.f32 %v2307_v22, %v2303_v4 }
 0x1d2   : > { %1662 = vpow2.f32 %v927_v11 }
 0x1d3   : > { %1046 = vadd.xlane.f32.xlu0 %v1045_v21  ;;  %806 = vmax.xlane.f32.xlu2 %v805_v15 }
 0x1d4   : > { %v765_v53 = vpop.xlane.xlu0 %764 }
 0x1d5   : > { %v853_v54 = vsub.f32 %v2168_v57, %v765_v53  ;;  %v854_v41 = vsub.f32 %v2170_v59, %v765_v53 }
 0x1d6   : > { %v2315_v24 = vpop.f32.mrf.mxu2 }
 0x1d7   : > { %v2317_v34 = vpop.eup %1660  ;;  %v929_v38 = vmul.f32 1.442695, %v853_v54  ;;  %v931_v40 = vmul.f32 1.442695, %v854_v41  ;;  %v808_v13 = vmax.f32 %v2311_v39, %v2315_v24 }
 0x1d8   : > { %v2321_v44 = vpop.eup %1662  ;;  %v2325_v57 = vpop.f32.mrf.mxu1 }
 0x1d9   : > { %1664 = vpow2.f32 %v929_v38  ;;  %v1048_v45 = vadd.f32 %v2321_v44, %v2317_v34 }
 0x1da   : > { %1666 = vpow2.f32 %v931_v40 }
 0x1db   : > { %1049 = vadd.xlane.f32.xlu1 %v1048_v45  ;;  %809 = vmax.xlane.f32.xlu0 %v808_v13 }
 0x1dc   : > { %739 = vmatmul.bf16.gmra.mxu3 %v2224_v31  ;;  %v768_v59 = vpop.xlane.xlu1 %767 }
 0x1dd   : > { %v855_v47 = vsub.f32 %v2174_v62, %v768_v59  ;;  %v856_v55 = vsub.f32 %v2176_v0, %v768_v59 }
 0x1de   : > { %v2330_v30 = vpop.f32.mrf.mxu2 }
 0x1df   : > { %v2332_v58 = vpop.eup %1664  ;;  %v933_v35 = vmul.f32 1.442695, %v855_v47  ;;  %v935_v48 = vmul.f32 1.442695, %v856_v55  ;;  %v811_v50 = vmax.f32 %v2325_v57, %v2330_v30 }
 0x1e0   : > { %v2336_v36 = vpop.eup %1666  ;;  %v2342_v11 = vpop.f32.mrf.mxu1 }
 0x1e1   : > { %1668 = vpow2.f32 %v933_v35  ;;  %v1051_v31 = vadd.f32 %v2336_v36, %v2332_v58  ;;  %2826 = vst [vmem:[#allocation7_spill] sm:$0xff] %v2342_v11 }
 0x1e2   : > { %1670 = vpow2.f32 %v935_v48 }
 0x1e3   : > { %1052 = vadd.xlane.f32.xlu2 %v1051_v31  ;;  %812 = vmax.xlane.f32.xlu1 %v811_v50 }
 0x1e4   : > { %v771_v62 = vpop.xlane.xlu2 %770 }
 0x1e5   : > { %v857_v0 = vsub.f32 %v2180_v3, %v771_v62  ;;  %v858_v10 = vsub.f32 %v2182_v5, %v771_v62 }
 0x1e6   : > { %v2344_v15 = vpop.f32.mrf.mxu2 }
 0x1e7   : > { %2827 = vst [vmem:[#allocation8_spill] sm:$0xff] %v2344_v15  ;;  %v2346_v21 = vpop.eup %1668  ;;  %v937_v53 = vmul.f32 1.442695, %v857_v0  ;;  %v939_v54 = vmul.f32 1.442695, %v858_v10  ;;  %v814_v41 = vmax.f32 %v2342_v11, %v2344_v15 }
 0x1e8   : > { %v2350_v38 = vpop.eup %1670 }
 0x1e9   : > { %1672 = vpow2.f32 %v937_v53  ;;  %v1054_v40 = vadd.f32 %v2350_v38, %v2346_v21 }
 0x1ea   : > { %1674 = vpow2.f32 %v939_v54 }
 0x1eb   : > { %1055 = vadd.xlane.f32.xlu0 %v1054_v40  ;;  %815 = vmax.xlane.f32.xlu2 %v814_v41 }
 0x1ec   : > { %v774_v3 = vpop.xlane.xlu0 %773 }
 0x1ed   : > { %v859_v5 = vsub.f32 %v2186_v8, %v774_v3  ;;  %v860_v13 = vsub.f32 %v2188_v9, %v774_v3 }
 0x1ee   : > { %v2356_v45 = vpop.f32.mrf.mxu3 }
 0x1ef   : > { %v2358_v59 = vpop.eup %1672  ;;  %v941_v47 = vmul.f32 1.442695, %v859_v5  ;;  %v943_v55 = vmul.f32 1.442695, %v860_v13 }
 0x1f0   : > { %v2360_v35 = vpop.eup %1674 }
 0x1f1   : > { %1676 = vpow2.f32 %v941_v47  ;;  %v1057_v48 = vadd.f32 %v2360_v35, %v2358_v59 }
 0x1f2   : > { %1678 = vpow2.f32 %v943_v55 }
 0x1f3   : > { %1058 = vadd.xlane.f32.xlu1 %v1057_v48 }
 0x1f4   : > { %v777_v50 = vpop.xlane.xlu1 %776 }
 0x1f5   : > { %v861_v31 = vsub.f32 %v2192_v12, %v777_v50  ;;  %v862_v8 = vsub.f32 %v2197_v14, %v777_v50 }
 0x1f6   : > { %v2366_v9 = vpop.f32.mrf.mxu3 }
 0x1f7   : > { %v2368_v62 = vpop.eup %1676  ;;  %v945_v0 = vmul.f32 1.442695, %v861_v31  ;;  %v947_v10 = vmul.f32 1.442695, %v862_v8 }
 0x1f8   : > { %v2370_v53 = vpop.eup %1678 }
 0x1f9   : > { %1680 = vpow2.f32 %v945_v0  ;;  %v1060_v54 = vadd.f32 %v2370_v53, %v2368_v62 }
 0x1fa   : > { %1682 = vpow2.f32 %v947_v10 }
 0x1fb   : > { %1061 = vadd.xlane.f32.xlu2 %v1060_v54 }
 0x1fc   : > { %v2386_v13 = vpop.xlane.xlu2 %779 }
 0x1fe   : > { %v2374_v41 = vpop.f32.mrf.mxu3 }
 0x1ff   : > { %v2376_v12 = vpop.eup %1680 }
 0x200   : > { %2828 = vst [vmem:[#allocation9_spill] sm:$0xff] %v2376_v12  ;;  %v2378_v14 = vpop.eup %1682 }
 0x201   : > { %2829 = vst [vmem:[#allocation10_spill] sm:$0xff] %v2378_v14  ;;  %v1063_v40 = vadd.f32 %v2378_v14, %v2376_v12 }
 0x203   : > { %1064 = vadd.xlane.f32.xlu0 %v1063_v40 }
 0x204   : > { %v2390_v55 = vpop.xlane.xlu0 %782 }
 0x206   : > { %v2382_v3 = vpop.f32.mrf.mxu3 }
 0x20c   : > { %v2396_v31 = vpop.xlane.xlu1 %785 }
 0x20e   : > { %v2384_v5 = vpop.f32.mrf.mxu3 }
 0x214   : > { %v2392_v48 = vpop.xlane.xlu2 %788 }
 0x216   : > { %v2388_v47 = vpop.f32.mrf.mxu3 }
 0x21c   : > { %v2398_v8 = vpop.xlane.xlu0 %791 }
 0x21e   : > { %v2394_v50 = vpop.f32.mrf.mxu3 }
 0x224   : > { %v2405_v40 = vpop.xlane.xlu1 %794 }
 0x226   : > { %v1035_v0 = vpop.xlane.xlu2 %1034  ;;  %v2400_v10 = vpop.f32.mrf.mxu3 }
 0x227   : > { %1684 = vrcp.f32 %v1035_v0 }
 0x22d   : > { %v1685_v54 = vpop.eup %1684 }
 0x22e   : > { %v1161_v15 = vmul.f32 %v1685_v54, %v2245_v32  ;;  %v1162_v11 = vmul.f32 %v1685_v54, %v2249_v63  ;;  %v1038_v14 = vpop.xlane.xlu0 %1037  ;;  %v2409_v12 = vpop.f32.mrf.mxu3 }
 0x22f   : > { %1686 = vrcp.f32 %v1038_v14  ;;  %v817_v0 = vmax.f32 %v2356_v45, %v2409_v12  ;;  %v2419_v14 = vpop.xlane.xlu2 %797 }
 0x230   : > { %1225 = vst [vmem:[%s2411_s6] sm:$0xff] %v1161_v15 }
 0x231   : > { %1226 = vst [vmem:[%s2411_s6 + $0x8] sm:$0xff] %v1162_v11  ;;  %818 = vmax.xlane.f32.xlu0 %v817_v0 }
 0x235   : > { %v1687_v2 = vpop.eup %1686 }
 0x236   : > { %v1163_v32 = vmul.f32 %v1687_v2, %v2259_v7  ;;  %v1164_v63 = vmul.f32 %v1687_v2, %v2263_v17  ;;  %v1041_v54 = vpop.xlane.xlu1 %1040  ;;  %v2421_v61 = vpop.f32.mrf.mxu3 }
 0x237   : > { %1688 = vrcp.f32 %v1041_v54  ;;  %2830 = vst [vmem:[#allocation11_spill] sm:$0xff] %v2421_v61  ;;  %v820_v15 = vmax.f32 %v2366_v9, %v2421_v61  ;;  %v2429_v17 = vpop.xlane.xlu0 %800 }
 0x238   : > { %1227 = vst [vmem:[%s2411_s6 + $0x10] sm:$0xff] %v1163_v32 }
 0x239   : > { %1228 = vst [vmem:[%s2411_s6 + $0x18] sm:$0xff] %v1164_v63  ;;  %821 = vmax.xlane.f32.xlu1 %v820_v15 }
 0x23d   : > { %v1689_v11 = vpop.eup %1688 }
 0x23e   : > { %v1165_v0 = vmul.f32 %v1689_v11, %v2274_v28  ;;  %v1166_v7 = vmul.f32 %v1689_v11, %v2278_v42  ;;  %v1044_v2 = vpop.xlane.xlu2 %1043  ;;  %v2439_v42 = vpop.xlane.xlu1 %803 }
 0x23f   : > { %1690 = vrcp.f32 %v1044_v2  ;;  %v2431_v54 = vpop.f32.mrf.mxu3 }
 0x240   : > { %1229 = vst [vmem:[%s2411_s6 + $0x20] sm:$0xff] %v1165_v0  ;;  %v823_v32 = vmax.f32 %v2374_v41, %v2431_v54 }
 0x241   : > { %1230 = vst [vmem:[%s2411_s6 + $0x28] sm:$0xff] %v1166_v7 }
 0x242   : > { %824 = vmax.xlane.f32.xlu2 %v823_v32 }
 0x245   : > { %v1691_v63 = vpop.eup %1690 }
 0x246   : > { %v1167_v15 = vmul.f32 %v1691_v63, %v2288_v52  ;;  %v1168_v28 = vmul.f32 %v1691_v63, %v2292_v60  ;;  %v1047_v11 = vpop.xlane.xlu0 %1046  ;;  %v865_v52 = vsub.f32 %v2207_v20, %v2390_v55  ;;  %v866_v60 = vsub.f32 %v2212_v23, %v2390_v55  ;;  %v2453_v63 = vpop.xlane.xlu2 %806 }
 0x247   : > { %1692 = vrcp.f32 %v1047_v11  ;;  %v2441_v61 = vpop.f32.mrf.mxu3  ;;  %v867_v23 = vsub.f32 %v2216_v25, %v2396_v31  ;;  %v871_v55 = vsub.f32 %v2231_v37, %v2398_v8 }
 0x248   : > { %1231 = vst [vmem:[%s2411_s6 + $0x30] sm:$0xff] %v1167_v15  ;;  %v826_v0 = vmax.f32 %v2382_v3, %v2441_v61  ;;  %v955_v20 = vmul.f32 1.442695, %v866_v60 }
 0x249   : > { %1232 = vst [vmem:[%s2411_s6 + $0x38] sm:$0xff] %v1168_v28 }
 0x24a   : > { %827 = vmax.xlane.f32.xlu0 %v826_v0  ;;  %v953_v0 = vmul.f32 1.442695, %v865_v52 }
 0x24d   : > { %v1693_v7 = vpop.eup %1692 }
 0x24e   : > { %v1169_v2 = vmul.f32 %v1693_v7, %v2303_v4  ;;  %v1170_v32 = vmul.f32 %v1693_v7, %v2307_v22  ;;  %v1050_v15 = vpop.xlane.xlu1 %1049  ;;  %v868_v4 = vsub.f32 %v2218_v27, %v2396_v31  ;;  %v872_v7 = vsub.f32 %v2235_v43, %v2398_v8 }
 0x24f   : > { %1694 = vrcp.f32 %v1050_v15  ;;  %v2455_v11 = vpop.f32.mrf.mxu3  ;;  %v863_v15 = vsub.f32 %v2201_v16, %v2386_v13  ;;  %v864_v43 = vsub.f32 %v2203_v18, %v2386_v13  ;;  %v877_v13 = vsub.f32 %v2265_v19, %v2429_v17 }
 0x250   : > { %1233 = vst [vmem:[%s2411_s6 + $0x40] sm:$0xff] %v1169_v2  ;;  %v829_v28 = vmax.f32 %v2384_v5, %v2455_v11  ;;  %1696 = vpow2.f32 %v953_v0  ;;  %v2471_v2 = vpop.xlane.xlu0 %809  ;;  %v959_v31 = vmul.f32 1.442695, %v868_v4  ;;  %v878_v4 = vsub.f32 %v2272_v26, %v2429_v17 }
 0x251   : > { %1234 = vst [vmem:[%s2411_s6 + $0x48] sm:$0xff] %v1170_v32  ;;  %1698 = vpow2.f32 %v955_v20  ;;  %v957_v32 = vmul.f32 1.442695, %v867_v23  ;;  %v874_v20 = vsub.f32 %v2243_v56, %v2405_v40  ;;  %v949_v23 = vmul.f32 1.442695, %v863_v15 }
 0x252   : > { %830 = vmax.xlane.f32.xlu1 %v829_v28  ;;  %v873_v28 = vsub.f32 %v2239_v51, %v2405_v40  ;;  %v951_v18 = vmul.f32 1.442695, %v864_v43 }
 0x254   : > { %v969_v40 = vmul.f32 1.442695, %v873_v28 }
 0x255   : > { %v1695_v22 = vpop.eup %1694 }
 0x256   : > { %v1171_v52 = vmul.f32 %v1695_v22, %v2317_v34  ;;  %v1172_v60 = vmul.f32 %v1695_v22, %v2321_v44  ;;  %v1053_v25 = vpop.xlane.xlu2 %1052  ;;  %v965_v34 = vmul.f32 1.442695, %v871_v55  ;;  %v967_v44 = vmul.f32 1.442695, %v872_v7  ;;  %v2483_v8 = vpop.eup %1696 }
 0x257   : > { %1700 = vrcp.f32 %v1053_v25  ;;  %v2473_v27 = vpop.f32.mrf.mxu3  ;;  %v2487_v0 = vpop.eup %1698 }
 0x258   : > { %1235 = vst [vmem:[%s2411_s6 + $0x50] sm:$0xff] %v1171_v52  ;;  %v832_v37 = vmax.f32 %v2388_v47, %v2473_v27  ;;  %1702 = vpow2.f32 %v957_v32  ;;  %v2497_v55 = vpop.xlane.xlu1 %812  ;;  %v971_v52 = vmul.f32 1.442695, %v874_v20  ;;  %v1069_v19 = vadd.f32 %v2487_v0, %v2483_v8 }
 0x259   : > { %1236 = vst [vmem:[%s2411_s6 + $0x58] sm:$0xff] %v1172_v60  ;;  %1704 = vpow2.f32 %v959_v31  ;;  %v977_v60 = vmul.f32 1.442695, %v877_v13  ;;  %v979_v32 = vmul.f32 1.442695, %v878_v4 }
 0x25a   : > { %833 = vmax.xlane.f32.xlu2 %v832_v37  ;;  %1706 = vpow2.f32 %v965_v34  ;;  %v879_v37 = vsub.f32 %v2280_v46, %v2439_v42  ;;  %v883_v34 = vsub.f32 %v2311_v39, %v2471_v2 }
 0x25b   : > { %1708 = vpow2.f32 %v967_v44  ;;  %v884_v44 = vsub.f32 %v2315_v24, %v2471_v2 }
 0x25c   : > { %v989_v13 = vmul.f32 1.442695, %v883_v34 }
 0x25d   : > { %v1701_v16 = vpop.eup %1700 }
 0x25e   : > { %v1173_v51 = vmul.f32 %v1701_v16, %v2332_v58  ;;  %v1174_v22 = vmul.f32 %v1701_v16, %v2336_v36  ;;  %v1056_v56 = vpop.xlane.xlu0 %1055  ;;  %v2506_v17 = vpop.eup %1702  ;;  %v869_v58 = vsub.f32 %v2222_v29, %v2392_v48  ;;  %v870_v36 = vsub.f32 %v2227_v33, %v2392_v48 }
 0x25f   : > { %1710 = vrcp.f32 %v1056_v56  ;;  %v2499_v7 = vpop.f32.mrf.mxu3  ;;  %v2513_v25 = vpop.eup %1704  ;;  %v880_v29 = vsub.f32 %v2286_v49, %v2439_v42  ;;  %v981_v16 = vmul.f32 1.442695, %v879_v37  ;;  %v876_v37 = vsub.f32 %v2257_v6, %v2419_v14 }
 0x260   : > { %1237 = vst [vmem:[%s2411_s6 + $0x60] sm:$0xff] %v1173_v51  ;;  %v835_v26 = vmax.f32 %v2394_v50, %v2499_v7  ;;  %1712 = vpow2.f32 %v949_v23  ;;  %v2515_v31 = vpop.eup %1706  ;;  %v961_v48 = vmul.f32 1.442695, %v869_v58  ;;  %v963_v43 = vmul.f32 1.442695, %v870_v36  ;;  %v2529_v20 = vpop.xlane.xlu2 %815 }
 0x261   : > { %1238 = vst [vmem:[%s2411_s6 + $0x68] sm:$0xff] %v1174_v22  ;;  %1714 = vpow2.f32 %v951_v18  ;;  %v2519_v15 = vpop.eup %1708  ;;  %v983_v39 = vmul.f32 1.442695, %v880_v29  ;;  %v991_v51 = vmul.f32 1.442695, %v884_v44 }
 0x262   : > { %1070 = vadd.xlane.f32.xlu2 %v1069_v19  ;;  %836 = vmax.xlane.f32.xlu0 %v835_v26  ;;  %1716 = vpow2.f32 %v969_v40  ;;  %v875_v40 = vsub.f32 %v2251_v1, %v2419_v14  ;;  %v885_v19 = vsub.f32 %v2325_v57, %v2497_v55  ;;  %v886_v26 = vsub.f32 %v2330_v30, %v2497_v55 }
 0x263   : > { %1718 = vpow2.f32 %v971_v52 }
 0x264   : > { %1720 = vpow2.f32 %v977_v60  ;;  %v973_v29 = vmul.f32 1.442695, %v875_v40 }
 0x265   : > { %v1711_v33 = vpop.eup %1710  ;;  %1722 = vpow2.f32 %v979_v32 }
 0x266   : > { %v1175_v46 = vmul.f32 %v1711_v33, %v2346_v21  ;;  %v1176_v28 = vmul.f32 %v1711_v33, %v2350_v38  ;;  %v1059_v49 = vpop.xlane.xlu1 %1058  ;;  %v2531_v42 = vpop.eup %1712  ;;  %v1078_v21 = vadd.f32 %v2519_v15, %v2515_v31  ;;  %v1072_v38 = vadd.f32 %v2513_v25, %v2506_v17 }
 0x267   : > { %1724 = vrcp.f32 %v1059_v49  ;;  %v2533_v23 = vpop.f32.mrf.mxu3  ;;  %v2535_v18 = vpop.eup %1714  ;;  %v2831_v49 = vld [vmem:[#allocation5_spill] sm:$0xff] }
 0x268   : > { %1239 = vst [vmem:[%s2411_s6 + $0x70] sm:$0xff] %v1175_v46  ;;  %v838_v24 = vmax.f32 %v2400_v10, %v2533_v23  ;;  %v2544_v2 = vpop.eup %1716  ;;  %1726 = vpow2.f32 %v961_v48  ;;  %v1066_v55 = vadd.f32 %v2535_v18, %v2531_v42  ;;  %v995_v48 = vmul.f32 1.442695, %v886_v26  ;;  %v2833_v26 = vld [vmem:[#allocation9_spill] sm:$0xff] }
 0x269   : > { %1240 = vst [vmem:[%s2411_s6 + $0x78] sm:$0xff] %v1176_v28  ;;  %v2547_v4 = vpop.eup %1718  ;;  %1728 = vpow2.f32 %v963_v43  ;;  %v975_v43 = vmul.f32 1.442695, %v876_v37  ;;  %v2835_v37 = vld [vmem:[#allocation7_spill] sm:$0xff] }
 0x26a   : > { %1079 = vadd.xlane.f32.xlu2 %v1078_v21  ;;  %1073 = vadd.xlane.f32.xlu0 %v1072_v38  ;;  %v2549_v22 = vpop.eup %1720  ;;  %1730 = vpow2.f32 %v981_v16  ;;  %v1081_v30 = vadd.f32 %v2547_v4, %v2544_v2  ;;  %v881_v16 = vsub.f32 %v2831_v49, %v2453_v63 }
 0x26b   : > { %839 = vmax.xlane.f32.xlu1 %v838_v24  ;;  %v2551_v56 = vpop.eup %1722  ;;  %1732 = vpow2.f32 %v983_v39  ;;  %v2832_v39 = vld [vmem:[#allocation6_spill] sm:$0xff] }
 0x26c   : > { %1734 = vpow2.f32 %v989_v13  ;;  %v1087_v57 = vadd.f32 %v2551_v56, %v2549_v22  ;;  %v882_v24 = vsub.f32 %v2832_v39, %v2453_v63  ;;  %v985_v63 = vmul.f32 1.442695, %v881_v16 }
 0x26d   : > { %v1725_v52 = vpop.eup %1724  ;;  %1736 = vpow2.f32 %v991_v51 }
 0x26e   : > { %v1177_v58 = vmul.f32 %v1725_v52, %v2358_v59  ;;  %v1178_v36 = vmul.f32 %v1725_v52, %v2360_v35  ;;  %v1062_v60 = vpop.xlane.xlu2 %1061  ;;  %v2561_v32 = vpop.eup %1726  ;;  %v993_v35 = vmul.f32 1.442695, %v885_v19  ;;  %v987_v40 = vmul.f32 1.442695, %v882_v24 }
 0x26f   : > { %1738 = vrcp.f32 %v1062_v60  ;;  %v2563_v1 = vpop.eup %1728 }
 0x270   : > { %1241 = vst [vmem:[%s2411_s6 + $0x80] sm:$0xff] %v1177_v58  ;;  %v2572_v59 = vpop.eup %1730  ;;  %1740 = vpow2.f32 %v973_v29  ;;  %v887_v29 = vsub.f32 %v2835_v37, %v2529_v20 }
 0x271   : > { %1242 = vst [vmem:[%s2411_s6 + $0x88] sm:$0xff] %v1178_v36  ;;  %v2577_v33 = vpop.eup %1732  ;;  %1742 = vpow2.f32 %v993_v35  ;;  %v2834_v36 = vld [vmem:[#allocation10_spill] sm:$0xff] }
 0x272   : > { %1088 = vadd.xlane.f32.xlu2 %v1087_v57  ;;  %1082 = vadd.xlane.f32.xlu0 %v1081_v30  ;;  %v2579_v6 = vpop.eup %1734  ;;  %1744 = vpow2.f32 %v995_v48  ;;  %v1090_v38 = vadd.f32 %v2577_v33, %v2572_v59  ;;  %v2836_v57 = vld [vmem:[#allocation8_spill] sm:$0xff]  ;;  %v997_v48 = vmul.f32 1.442695, %v887_v29 }
 0x273   : > { %1067 = vadd.xlane.f32.xlu1 %v1066_v55  ;;  %v2581_v14 = vpop.eup %1736  ;;  %v888_v30 = vsub.f32 %v2836_v57, %v2529_v20 }
 0x274   : > { %v1096_v21 = vadd.f32 %v2581_v14, %v2579_v6 }
 0x275   : > { %v1739_v34 = vpop.eup %1738 }
 0x276   : > { %v1179_v44 = vmul.f32 %v1739_v34, %v2368_v62  ;;  %v1180_v46 = vmul.f32 %v1739_v34, %v2370_v53  ;;  %v1065_v28 = vpop.xlane.xlu0 %1064  ;;  %v1075_v62 = vadd.f32 %v2563_v1, %v2561_v32  ;;  %v2597_v53 = vpop.eup %1740 }
 0x277   : > { %1746 = vrcp.f32 %v1065_v28  ;;  %v2599_v13 = vpop.eup %1742 }
 0x278   : > { %1748 = vpow2.f32 %v975_v43  ;;  %1243 = vst [vmem:[%s2411_s6 + $0x90] sm:$0xff] %v1179_v44  ;;  %v2601_v51 = vpop.eup %1744  ;;  %v999_v43 = vmul.f32 1.442695, %v888_v30 }
 0x279   : > { %1244 = vst [vmem:[%s2411_s6 + $0x98] sm:$0xff] %v1180_v46  ;;  %1750 = vpow2.f32 %v985_v63  ;;  %v1099_v35 = vadd.f32 %v2601_v51, %v2599_v13 }
 0x27a   : > { %1097 = vadd.xlane.f32.xlu2 %v1096_v21  ;;  %1091 = vadd.xlane.f32.xlu0 %v1090_v38  ;;  %1752 = vpow2.f32 %v987_v40  ;;  %v2837_v40 = vld [vmem:[#allocation11_spill] sm:$0xff] }
 0x27b   : > { %1076 = vadd.xlane.f32.xlu1 %v1075_v62  ;;  %1754 = vpow2.f32 %v997_v48 }
 0x27c   : > { %1756 = vpow2.f32 %v999_v43 }
 0x27d   : > { %v1747_v52 = vpop.eup %1746 }
 0x27e   : > { %v2603_v19 = vpop.eup %1748  ;;  %v1181_v58 = vmul.f32 %v1747_v52, %v2833_v26  ;;  %v1182_v60 = vmul.f32 %v1747_v52, %v2834_v36 }
 0x27f   : > { %v1084_v55 = vadd.f32 %v2603_v19, %v2597_v53  ;;  %v2617_v34 = vpop.eup %1750 }
 0x280   : > { %1245 = vst [vmem:[%s2411_s6 + $0xa0] sm:$0xff] %v1181_v58  ;;  %v2619_v44 = vpop.eup %1752 }
 0x281   : > { %1246 = vst [vmem:[%s2411_s6 + $0xa8] sm:$0xff] %v1182_v60  ;;  %v1093_v20 = vadd.f32 %v2619_v44, %v2617_v34  ;;  %v2623_v46 = vpop.eup %1754 }
 0x282   : > { %1100 = vadd.xlane.f32.xlu0 %v1099_v35  ;;  %v2625_v28 = vpop.eup %1756 }
 0x283   : > { %1085 = vadd.xlane.f32.xlu1 %v1084_v55  ;;  %v1102_v49 = vadd.f32 %v2625_v28, %v2623_v46 }
 0x28b   : > { %1094 = vadd.xlane.f32.xlu1 %v1093_v20 }
 0x293   : > { %1103 = vadd.xlane.f32.xlu1 %v1102_v49 }
 0x2a4   : > { %v819_v16 = vpop.xlane.xlu0 %818 }
 0x2a5   : > { %v889_v39 = vsub.f32 %v2356_v45, %v819_v16  ;;  %v890_v24 = vsub.f32 %v2409_v12, %v819_v16 }
 0x2a7   : > { %v1001_v21 = vmul.f32 1.442695, %v889_v39  ;;  %v1003_v38 = vmul.f32 1.442695, %v890_v24 }
 0x2a9   : > { %1758 = vpow2.f32 %v1001_v21 }
 0x2aa   : > { %1760 = vpow2.f32 %v1003_v38 }
 0x2ac   : > { %v822_v62 = vpop.xlane.xlu1 %821 }
 0x2ad   : > { %v891_v63 = vsub.f32 %v2366_v9, %v822_v62  ;;  %v892_v52 = vsub.f32 %v2837_v40, %v822_v62 }
 0x2af   : > { %v2633_v26 = vpop.eup %1758  ;;  %v1005_v58 = vmul.f32 1.442695, %v891_v63  ;;  %v1007_v36 = vmul.f32 1.442695, %v892_v52 }
 0x2b0   : > { %v2635_v60 = vpop.eup %1760 }
 0x2b1   : > { %1762 = vpow2.f32 %v1005_v58  ;;  %v1105_v45 = vadd.f32 %v2635_v60, %v2633_v26 }
 0x2b2   : > { %1764 = vpow2.f32 %v1007_v36 }
 0x2b3   : > { %1106 = vadd.xlane.f32.xlu2 %v1105_v45 }
 0x2b5   : > { %v825_v12 = vpop.xlane.xlu2 %824 }
 0x2b6   : > { %v893_v37 = vsub.f32 %v2374_v41, %v825_v12  ;;  %v894_v29 = vsub.f32 %v2431_v54, %v825_v12 }
 0x2b7   : > { %v2641_v9 = vpop.eup %1762 }
 0x2b8   : > { %v1009_v57 = vmul.f32 1.442695, %v893_v37  ;;  %v1011_v30 = vmul.f32 1.442695, %v894_v29  ;;  %v2643_v35 = vpop.eup %1764 }
 0x2b9   : > { %v1108_v55 = vadd.f32 %v2643_v35, %v2641_v9 }
 0x2ba   : > { %1766 = vpow2.f32 %v1009_v57 }
 0x2bb   : > { %1768 = vpow2.f32 %v1011_v30  ;;  %1109 = vadd.xlane.f32.xlu0 %v1108_v55 }
 0x2bd   : > { %v828_v48 = vpop.xlane.xlu0 %827 }
 0x2be   : > { %v895_v43 = vsub.f32 %v2382_v3, %v828_v48  ;;  %v896_v20 = vsub.f32 %v2441_v61, %v828_v48 }
 0x2c0   : > { %v2649_v41 = vpop.eup %1766  ;;  %v1013_v54 = vmul.f32 1.442695, %v895_v43  ;;  %v1015_v49 = vmul.f32 1.442695, %v896_v20 }
 0x2c1   : > { %v2651_v16 = vpop.eup %1768 }
 0x2c2   : > { %1770 = vpow2.f32 %v1013_v54  ;;  %v1111_v39 = vadd.f32 %v2651_v16, %v2649_v41 }
 0x2c3   : > { %1772 = vpow2.f32 %v1015_v49 }
 0x2c4   : > { %1112 = vadd.xlane.f32.xlu1 %v1111_v39 }
 0x2c5   : > { %v831_v24 = vpop.xlane.xlu1 %830 }
 0x2c6   : > { %v897_v21 = vsub.f32 %v2384_v5, %v831_v24  ;;  %v898_v38 = vsub.f32 %v2455_v11, %v831_v24 }
 0x2c8   : > { %v2657_v3 = vpop.eup %1770  ;;  %v1017_v61 = vmul.f32 1.442695, %v897_v21  ;;  %v1019_v62 = vmul.f32 1.442695, %v898_v38 }
 0x2c9   : > { %v2659_v63 = vpop.eup %1772 }
 0x2ca   : > { %1774 = vpow2.f32 %v1017_v61  ;;  %v1114_v40 = vadd.f32 %v2659_v63, %v2657_v3 }
 0x2cb   : > { %1776 = vpow2.f32 %v1019_v62 }
 0x2cc   : > { %1115 = vadd.xlane.f32.xlu2 %v1114_v40 }
 0x2cd   : > { %v834_v52 = vpop.xlane.xlu2 %833 }
 0x2ce   : > { %v899_v58 = vsub.f32 %v2388_v47, %v834_v52  ;;  %v900_v36 = vsub.f32 %v2473_v27, %v834_v52 }
 0x2d0   : > { %v2665_v5 = vpop.eup %1774  ;;  %v1021_v11 = vmul.f32 1.442695, %v899_v58  ;;  %v1023_v45 = vmul.f32 1.442695, %v900_v36 }
 0x2d1   : > { %v2667_v12 = vpop.eup %1776 }
 0x2d2   : > { %1778 = vpow2.f32 %v1021_v11  ;;  %v1117_v37 = vadd.f32 %v2667_v12, %v2665_v5 }
 0x2d3   : > { %1780 = vpow2.f32 %v1023_v45 }
 0x2d4   : > { %1118 = vadd.xlane.f32.xlu0 %v1117_v37 }
 0x2d5   : > { %v1071_v29 = vpop.xlane.xlu2 %1070  ;;  %v837_v57 = vpop.xlane.xlu0 %836 }
 0x2d6   : > { %1782 = vrcp.f32 %v1071_v29  ;;  %v901_v30 = vsub.f32 %v2394_v50, %v837_v57  ;;  %v902_v47 = vsub.f32 %v2499_v7, %v837_v57 }
 0x2d8   : > { %v2673_v27 = vpop.eup %1778  ;;  %v1025_v55 = vmul.f32 1.442695, %v901_v30  ;;  %v1027_v48 = vmul.f32 1.442695, %v902_v47 }
 0x2d9   : > { %v2675_v43 = vpop.eup %1780 }
 0x2da   : > { %1784 = vpow2.f32 %v1025_v55  ;;  %v1120_v20 = vadd.f32 %v2675_v43, %v2673_v27 }
 0x2db   : > { %1786 = vpow2.f32 %v1027_v48 }
 0x2dc   : > { %v1783_v54 = vpop.eup %1782  ;;  %1121 = vadd.xlane.f32.xlu1 %v1120_v20 }
 0x2dd   : > { %v1185_v49 = vmul.f32 %v1783_v54, %v2483_v8  ;;  %v1186_v50 = vmul.f32 %v1783_v54, %v2487_v0  ;;  %v1080_v7 = vpop.xlane.xlu2 %1079  ;;  %v1074_v39 = vpop.xlane.xlu0 %1073 }
 0x2de   : > { %1788 = vrcp.f32 %v1080_v7  ;;  %v840_v24 = vpop.xlane.xlu1 %839 }
 0x2df   : > { %1249 = vst [vmem:[%s2411_s6 + $0xc0] sm:$0xff] %v1185_v49  ;;  %1790 = vrcp.f32 %v1074_v39  ;;  %v903_v21 = vsub.f32 %v2400_v10, %v840_v24  ;;  %v904_v38 = vsub.f32 %v2533_v23, %v840_v24 }
 0x2e0   : > { %v2684_v61 = vpop.eup %1784  ;;  %1250 = vst [vmem:[%s2411_s6 + $0xc8] sm:$0xff] %v1186_v50 }
 0x2e1   : > { %v2687_v62 = vpop.eup %1786  ;;  %v1029_v40 = vmul.f32 1.442695, %v903_v21  ;;  %v1031_v8 = vmul.f32 1.442695, %v904_v38 }
 0x2e2   : > { %v1123_v0 = vadd.f32 %v2687_v62, %v2684_v61 }
 0x2e3   : > { %1792 = vpow2.f32 %v1029_v40 }
 0x2e4   : > { %v1789_v52 = vpop.eup %1788  ;;  %1794 = vpow2.f32 %v1031_v8  ;;  %1124 = vadd.xlane.f32.xlu2 %v1123_v0 }
 0x2e5   : > { %v1791_v10 = vpop.eup %1790  ;;  %v1191_v23 = vmul.f32 %v1789_v52, %v2515_v31  ;;  %v1192_v58 = vmul.f32 %v1789_v52, %v2519_v15  ;;  %v1089_v36 = vpop.xlane.xlu2 %1088 }
 0x2e6   : > { %v1083_v11 = vpop.xlane.xlu0 %1082  ;;  %v1187_v45 = vmul.f32 %v1791_v10, %v2506_v17  ;;  %v1188_v37 = vmul.f32 %v1791_v10, %v2513_v25  ;;  %1796 = vrcp.f32 %v1089_v36  ;;  %v1068_v29 = vpop.xlane.xlu1 %1067 }
 0x2e7   : > { %1255 = vst [vmem:[%s2411_s6 + $0xf0] sm:$0xff] %v1191_v23  ;;  %1798 = vrcp.f32 %v1083_v11 }
 0x2e8   : > { %1256 = vst [vmem:[%s2411_s6 + $0xf8] sm:$0xff] %v1192_v58  ;;  %1800 = vrcp.f32 %v1068_v29 }
 0x2e9   : > { %v2697_v57 = vpop.eup %1792  ;;  %1251 = vst [vmem:[%s2411_s6 + $0xd0] sm:$0xff] %v1187_v45 }
 0x2ea   : > { %v2700_v30 = vpop.eup %1794  ;;  %1252 = vst [vmem:[%s2411_s6 + $0xd8] sm:$0xff] %v1188_v37 }
 0x2eb   : > { %v1126_v31 = vadd.f32 %v2700_v30, %v2697_v57 }
 0x2ec   : > { %v1797_v17 = vpop.eup %1796 }
 0x2ed   : > { %v1799_v15 = vpop.eup %1798  ;;  %v1197_v25 = vmul.f32 %v1797_v17, %v2549_v22  ;;  %v1198_v47 = vmul.f32 %v1797_v17, %v2551_v56  ;;  %1127 = vadd.xlane.f32.xlu0 %v1126_v31  ;;  %v1098_v55 = vpop.xlane.xlu2 %1097 }
 0x2ee   : > { %v1092_v48 = vpop.xlane.xlu0 %1091  ;;  %v1801_v20 = vpop.eup %1800  ;;  %v1193_v54 = vmul.f32 %v1799_v15, %v2544_v2  ;;  %v1194_v49 = vmul.f32 %v1799_v15, %v2547_v4  ;;  %1802 = vrcp.f32 %v1098_v55 }
 0x2ef   : > { %v1077_v50 = vpop.xlane.xlu1 %1076  ;;  %1261 = vst [vmem:[%s2411_s6 + $0x120] sm:$0xff] %v1197_v25  ;;  %v1183_v7 = vmul.f32 %v1801_v20, %v2531_v42  ;;  %1804 = vrcp.f32 %v1092_v48  ;;  %v1184_v22 = vmul.f32 %v1801_v20, %v2535_v18 }
 0x2f0   : > { %1262 = vst [vmem:[%s2411_s6 + $0x128] sm:$0xff] %v1198_v47  ;;  %1806 = vrcp.f32 %v1077_v50 }
 0x2f1   : > { %1257 = vst [vmem:[%s2411_s6 + $0x100] sm:$0xff] %v1193_v54 }
 0x2f2   : > { %1258 = vst [vmem:[%s2411_s6 + $0x108] sm:$0xff] %v1194_v49 }
 0x2f3   : > { %1247 = vst [vmem:[%s2411_s6 + $0xb0] sm:$0xff] %v1183_v7 }
 0x2f4   : > { %v1803_v56 = vpop.eup %1802  ;;  %1248 = vst [vmem:[%s2411_s6 + $0xb8] sm:$0xff] %v1184_v22 }
 0x2f5   : > { %v1805_v2 = vpop.eup %1804  ;;  %v1203_v4 = vmul.f32 %v1803_v56, %v2579_v6  ;;  %v1204_v42 = vmul.f32 %v1803_v56, %v2581_v14 }
 0x2f6   : > { %v1101_v39 = vpop.xlane.xlu0 %1100  ;;  %v1807_v24 = vpop.eup %1806  ;;  %v1199_v18 = vmul.f32 %v1805_v2, %v2572_v59  ;;  %v1200_v21 = vmul.f32 %v1805_v2, %v2577_v33 }
 0x2f7   : > { %1808 = vrcp.f32 %v1101_v39  ;;  %v1086_v38 = vpop.xlane.xlu1 %1085  ;;  %1267 = vst [vmem:[%s2411_s6 + $0x150] sm:$0xff] %v1203_v4  ;;  %v1189_v40 = vmul.f32 %v1807_v24, %v2561_v32  ;;  %v1190_v6 = vmul.f32 %v1807_v24, %v2563_v1 }
 0x2f8   : > { %1810 = vrcp.f32 %v1086_v38  ;;  %1268 = vst [vmem:[%s2411_s6 + $0x158] sm:$0xff] %v1204_v42 }
 0x2f9   : > { %1263 = vst [vmem:[%s2411_s6 + $0x130] sm:$0xff] %v1199_v18 }
 0x2fa   : > { %1264 = vst [vmem:[%s2411_s6 + $0x138] sm:$0xff] %v1200_v21 }
 0x2fb   : > { %1253 = vst [vmem:[%s2411_s6 + $0xe0] sm:$0xff] %v1189_v40 }
 0x2fc   : > { %1254 = vst [vmem:[%s2411_s6 + $0xe8] sm:$0xff] %v1190_v6 }
 0x2fd   : > { %v1809_v14 = vpop.eup %1808 }
 0x2fe   : > { %v1811_v59 = vpop.eup %1810  ;;  %v1205_v33 = vmul.f32 %v1809_v14, %v2599_v13  ;;  %v1206_v8 = vmul.f32 %v1809_v14, %v2601_v51 }
 0x2ff   : > { %v1195_v32 = vmul.f32 %v1811_v59, %v2597_v53  ;;  %v1196_v0 = vmul.f32 %v1811_v59, %v2603_v19  ;;  %v1095_v52 = vpop.xlane.xlu1 %1094 }
 0x300   : > { %1269 = vst [vmem:[%s2411_s6 + $0x160] sm:$0xff] %v1205_v33  ;;  %1812 = vrcp.f32 %v1095_v52 }
 0x301   : > { %1270 = vst [vmem:[%s2411_s6 + $0x168] sm:$0xff] %v1206_v8 }
 0x302   : > { %1259 = vst [vmem:[%s2411_s6 + $0x110] sm:$0xff] %v1195_v32 }
 0x303   : > { %1260 = vst [vmem:[%s2411_s6 + $0x118] sm:$0xff] %v1196_v0 }
 0x306   : > { %v1813_v1 = vpop.eup %1812 }
 0x307   : > { %v1201_v10 = vmul.f32 %v1813_v1, %v2617_v34  ;;  %v1202_v13 = vmul.f32 %v1813_v1, %v2619_v44  ;;  %v1104_v23 = vpop.xlane.xlu1 %1103 }
 0x308   : > { %1814 = vrcp.f32 %v1104_v23 }
 0x309   : > { %1265 = vst [vmem:[%s2411_s6 + $0x140] sm:$0xff] %v1201_v10 }
 0x30a   : > { %1266 = vst [vmem:[%s2411_s6 + $0x148] sm:$0xff] %v1202_v13 }
 0x30e   : > { %v1815_v53 = vpop.eup %1814 }
 0x30f   : > { %v1207_v51 = vmul.f32 %v1815_v53, %v2623_v46  ;;  %v1208_v19 = vmul.f32 %v1815_v53, %v2625_v28 }
 0x311   : > { %1271 = vst [vmem:[%s2411_s6 + $0x170] sm:$0xff] %v1207_v51 }
 0x312   : > { %1272 = vst [vmem:[%s2411_s6 + $0x178] sm:$0xff] %v1208_v19 }
 0x326   : > { %v1107_v58 = vpop.xlane.xlu2 %1106 }
 0x327   : > { %1816 = vrcp.f32 %v1107_v58 }
 0x32d   : > { %v1817_v34 = vpop.eup %1816 }
 0x32e   : > { %v1209_v44 = vmul.f32 %v1817_v34, %v2633_v26  ;;  %v1210_v36 = vmul.f32 %v1817_v34, %v2635_v60  ;;  %v1110_v11 = vpop.xlane.xlu0 %1109 }
 0x32f   : > { %1818 = vrcp.f32 %v1110_v11 }
 0x330   : > { %1273 = vst [vmem:[%s2411_s6 + $0x180] sm:$0xff] %v1209_v44 }
 0x331   : > { %1274 = vst [vmem:[%s2411_s6 + $0x188] sm:$0xff] %v1210_v36 }
 0x335   : > { %v1819_v46 = vpop.eup %1818 }
 0x336   : > { %v1211_v28 = vmul.f32 %v1819_v46, %v2641_v9  ;;  %v1212_v45 = vmul.f32 %v1819_v46, %v2643_v35 }
 0x337   : > { %v1113_v37 = vpop.xlane.xlu1 %1112 }
 0x338   : > { %1820 = vrcp.f32 %v1113_v37  ;;  %1275 = vst [vmem:[%s2411_s6 + $0x190] sm:$0xff] %v1211_v28 }
 0x339   : > { %1276 = vst [vmem:[%s2411_s6 + $0x198] sm:$0xff] %v1212_v45 }
 0x33e   : > { %v1821_v26 = vpop.eup %1820 }
 0x33f   : > { %v1213_v60 = vmul.f32 %v1821_v26, %v2649_v41  ;;  %v1214_v29 = vmul.f32 %v1821_v26, %v2651_v16  ;;  %v1116_v31 = vpop.xlane.xlu2 %1115 }
 0x340   : > { %1822 = vrcp.f32 %v1116_v31 }
 0x341   : > { %1277 = vst [vmem:[%s2411_s6 + $0x1a0] sm:$0xff] %v1213_v60 }
 0x342   : > { %1278 = vst [vmem:[%s2411_s6 + $0x1a8] sm:$0xff] %v1214_v29 }
 0x346   : > { %v1823_v9 = vpop.eup %1822 }
 0x347   : > { %v1215_v35 = vmul.f32 %v1823_v9, %v2657_v3  ;;  %v1216_v17 = vmul.f32 %v1823_v9, %v2659_v63  ;;  %v1119_v15 = vpop.xlane.xlu0 %1118 }
 0x348   : > { %1824 = vrcp.f32 %v1119_v15 }
 0x349   : > { %1279 = vst [vmem:[%s2411_s6 + $0x1b0] sm:$0xff] %v1215_v35 }
 0x34a   : > { %1280 = vst [vmem:[%s2411_s6 + $0x1b8] sm:$0xff] %v1216_v17 }
 0x34e   : > { %v1825_v41 = vpop.eup %1824 }
 0x34f   : > { %v1217_v16 = vmul.f32 %v1825_v41, %v2665_v5  ;;  %v1218_v25 = vmul.f32 %v1825_v41, %v2667_v12  ;;  %v1122_v47 = vpop.xlane.xlu1 %1121 }
 0x350   : > { %1826 = vrcp.f32 %v1122_v47 }
 0x351   : > { %1281 = vst [vmem:[%s2411_s6 + $0x1c0] sm:$0xff] %v1217_v16 }
 0x352   : > { %1282 = vst [vmem:[%s2411_s6 + $0x1c8] sm:$0xff] %v1218_v25 }
 0x356   : > { %v1827_v3 = vpop.eup %1826 }
 0x357   : > { %v1219_v63 = vmul.f32 %v1827_v3, %v2673_v27  ;;  %v1220_v55 = vmul.f32 %v1827_v3, %v2675_v43  ;;  %v1125_v48 = vpop.xlane.xlu2 %1124 }
 0x358   : > { %1828 = vrcp.f32 %v1125_v48 }
 0x359   : > { %1283 = vst [vmem:[%s2411_s6 + $0x1d0] sm:$0xff] %v1219_v63 }
 0x35a   : > { %1284 = vst [vmem:[%s2411_s6 + $0x1d8] sm:$0xff] %v1220_v55 }
 0x35e   : > { %v1829_v5 = vpop.eup %1828 }
 0x35f   : > { %v1221_v12 = vmul.f32 %v1829_v5, %v2684_v61  ;;  %v1222_v20 = vmul.f32 %v1829_v5, %v2687_v62 }
 0x360   : > { %v1128_v54 = vpop.xlane.xlu0 %1127 }
 0x361   : > { %1285 = vst [vmem:[%s2411_s6 + $0x1e0] sm:$0xff] %v1221_v12  ;;  %1830 = vrcp.f32 %v1128_v54 }
 0x362   : > { %1286 = vst [vmem:[%s2411_s6 + $0x1e8] sm:$0xff] %v1222_v20 }
 0x367   : > { %v1831_v27 = vpop.eup %1830 }
 0x368   : > { %v1223_v43 = vmul.f32 %v1831_v27, %v2697_v57  ;;  %v1224_v61 = vmul.f32 %v1831_v27, %v2700_v30 }
 0x36a   : > { %1287 = vst [vmem:[%s2411_s6 + $0x1f0] sm:$0xff] %v1223_v43 }
 0x36b   : > { %1288 = vst [vmem:[%s2411_s6 + $0x1f8] sm:$0xff] %v1224_v61 }
 0x36c   : > { %1859 = shalt.err (!%p1856_p3)
}
 0x36d   : > { %s1896_s30 = smov 256   ;;  %s1897_s4 = smov 16  }
 0x36e   : > { %1599 = dma.vmem_to_hbm [thread:$0]  (%p1956_p5), %s1304_s17, 8192, %s1306_s19, %s1290_s16, %s1896_s30, %s1896_s30, %s1897_s4  }
 0x36f PF: > { %p1605_p4 = scmp.ge.s32.totalorder %s1894_s15, 2  ;;  %s1320_s9 = sand.u32 1, %s1882_s12  }
 0x370   : > { %s1321_s5 = scalar_lea.sflag [#allocation3], %s1320_s9 }
 0x371   : > { %p1602_p7 = pnand %p1605_p4, %p1960_p6 }
 0x373   : > { %p1603_p8 = pneg %p1602_p7 }
 0x375   : > { %1877 = dma.done.wait (%p1603_p8), %s1321_s5, 8192  }
 0x376   : > { %1879 = vsyncadd (%p1603_p8), %s1321_s5, 4294959104  ;;  %p13_p9 = scmp.ge.s32.totalorder %s1943_s18, 4   ;;  %s2838_s12 = smov %s1886_s13 }
 0x377   : > { %s2839_s13 = smov %s1890_s14  ;;  %s2840_s14 = smov %s1954_s21 }
 0x378   : > { %s2841_s15 = smov %s1943_s18  ;;  %15 = sbr.rel (!%p13_p9) target bundleno = 3 (0x3), region = 67 }
 0x37d   :  { %1327 = vsyncpa [#allocation3], 1 }
 0x37e   :  { %1329 = vsyncpa [#allocation3 + $0x1], 1 }

</bundles_post_ra>
